<compile_context>
chip_gen: v5e
topology: v5e:2x2
jax: 0.10.0
libtpu: 0.0.40
codegen_flags: <defaults>
</compile_context>

<pallas_src>
import functools

import jax
import jax.numpy as jnp
from jax import lax
from jax.experimental import pallas as pl
from jax.experimental.pallas import tpu as pltpu


def _round_up(x, m):
    return (x + m - 1) // m * m


def _leaky_relu(x, slope=0.01):
    return jnp.where(x >= 0, x, slope * x)


def _compgcn_kernel(alpha_col,
                    src_ref, xjrel_ref,                        # per edge tile
                    ent_ref, rel_ref,                          # resident tables
                    w_out_ref, w_loop_ref, w_rel_ref, loop_rel_ref,
                    invdeg_ref, bias_ref, gamma_ref, beta_ref,
                    node_out_ref, rel_out_ref):                # outputs (node_out = accumulator)
    f32 = jnp.float32
    bf16 = jnp.bfloat16
    t = pl.program_id(0)
    n_tiles = pl.num_programs(0)
    TE = src_ref.shape[0]
    N = node_out_ref.shape[0]

    @pl.when(t == 0)
    def _init():
        node_out_ref[...] = jnp.zeros_like(node_out_ref)

    # ---- message projection on the bf16 MXU path -----------------------------
    # xjrel already carries alpha (alpha * x_j * rel, plus alpha itself in input
    # column Din); the routing row of w_out sends alpha to output column
    # `alpha_col`, so this one matmul yields alpha-weighted messages AND alpha.
    msg = jnp.dot(xjrel_ref[...], w_out_ref[...], preferred_element_type=f32)

    # ---- scatter-add to nodes: exact 0/1 one-hot, bf16 MXU, f32 accumulation --
    # (padded edges carry src == N, which never matches -> zero rows)
    iota_n = lax.broadcasted_iota(jnp.int32, (TE, N), 1)
    oh = (src_ref[...] == iota_n).astype(bf16)                 # (TE, N)
    node_out_ref[...] += lax.dot_general(
        oh, msg.astype(bf16), (((0,), (0,)), ((), ())),
        preferred_element_type=f32)

    # ---- finalize on the last edge tile ---------------------------------------
    @pl.when(t == n_tiles - 1)
    def _finalize():
        acc = node_out_ref[...]                                # (N, Do) f32
        a_sum = acc[:, alpha_col:alpha_col + 1]                # (N, 1) alpha sums
        # 1/deg[src] and 1/sum_alpha[src] are per-source-node constants.
        scale = invdeg_ref[...] * jnp.where(
            a_sum > 0, 1.0 / jnp.maximum(a_sum, 1e-30), 0.0)
        loop_res = jnp.dot(ent_ref[...] * loop_rel_ref[...], w_loop_ref[...],
                           preferred_element_type=f32)         # (N, Do), one-time f32
        out = 0.5 * acc * scale + 0.5 * loop_res + bias_ref[...]
        # BatchNorm1d, training-mode batch statistics (biased var, eps=1e-5)
        mean = jnp.mean(out, axis=0, keepdims=True)
        var = jnp.mean((out - mean) ** 2, axis=0, keepdims=True)
        out = (out - mean) * lax.rsqrt(var + 1e-5) * gamma_ref[...] + beta_ref[...]
        node_out_ref[...] = _leaky_relu(out)

        rel_all = rel_ref[...]                                 # (R1, Dp)
        rel_out_ref[...] = jnp.dot(rel_all[:-1, :], w_rel_ref[...],
                                   preferred_element_type=f32)


def compgcn_forward(edge_index, edge_type, query_type, entity_embed, rel_embed,
                    params, *, edge_tile=1024):
    f32 = jnp.float32
    bf16 = jnp.bfloat16
    N, Din = entity_embed.shape
    Dout = params["w_out"].shape[1]
    E = edge_index.shape[1]
    R = rel_embed.shape[0]
    R1 = R + 1

    # Lane-dense padding; +1 guarantees a spare input column (alpha carrier)
    # and a spare output column (alpha sum).
    Dp = _round_up(Din + 1, 128)
    Do = _round_up(Dout + 1, 128)
    alpha_col = Dout

    ent_f = entity_embed.astype(f32)
    rel_full = jnp.concatenate([rel_embed.astype(f32),
                                params["loop_rel"].astype(f32)], axis=0)   # (R1, Din)

    # ---- attention folded to a per-(edge_type, query_type) scalar (exact) ----
    #   a([W r, W q]) = r @ (W^T a1) + q @ (W^T a2) + (W_b.(a1+a2) + a_b)
    a1 = params["a_w"][0, :Din].astype(f32)
    a2 = params["a_w"][0, Din:].astype(f32)
    v1 = params["W_w"].astype(f32).T @ a1
    v2 = params["W_w"].astype(f32).T @ a2
    c0 = params["W_b"].astype(f32) @ (a1 + a2) + params["a_b"].astype(f32)[0]
    rel_v1 = rel_full @ v1                                     # (R1,)
    rel_v2 = rel_full @ v2                                     # (R1,)

    src = (edge_index[0] % N).astype(jnp.int32)
    dst = (edge_index[1] % N).astype(jnp.int32)
    et = edge_type.astype(jnp.int32)
    qt = query_type.astype(jnp.int32)

    a_pre = rel_v1[et] + rel_v2[qt] + c0
    alpha = jnp.exp(_leaky_relu(a_pre))                        # (E,) unnormalized (matches module)

    # ---- per-edge messages pre-gathered in the wrapper, streamed as bf16 tiles
    rel_e = rel_full[et]                                       # (E, Din)
    xjrel = ent_f[dst] * rel_e                                 # rel_transform('mult')

    n_tiles = int(pl.cdiv(E, edge_tile))
    e_pad = n_tiles * edge_tile
    xjrel_aug = jnp.zeros((e_pad, Dp), f32)
    xjrel_aug = xjrel_aug.at[:E, :Din].set(xjrel * alpha[:, None])
    xjrel_aug = xjrel_aug.at[:E, Din].set(alpha)               # alpha carrier column
    xjrel_aug = xjrel_aug.astype(bf16)

    src_col = jnp.full((e_pad, 1), N, jnp.int32).at[:E, 0].set(src)

    # compute_norm in the wrapper: 1/deg[src] is constant per source node.
    deg = jnp.zeros((N,), f32).at[src].add(1.0)
    inv_deg = jnp.where(deg > 0, 1.0 / jnp.maximum(deg, 1.0), 0.0).reshape(N, 1)

    # ---- padded resident operands --------------------------------------------
    ent_p = jnp.zeros((N, Dp), f32).at[:, :Din].set(ent_f)
    rel_p = jnp.zeros((R1, Dp), f32).at[:, :Din].set(rel_full)
    loop_rel_p = jnp.zeros((1, Dp), f32).at[:, :Din].set(params["loop_rel"].astype(f32))

    w_out_p = jnp.zeros((Dp, Do), f32).at[:Din, :Dout].set(params["w_out"].astype(f32))
    w_out_p = w_out_p.at[Din, alpha_col].set(1.0).astype(bf16)   # alpha routing row
    w_loop_p = jnp.zeros((Dp, Do), f32).at[:Din, :Dout].set(params["w_loop"].astype(f32))
    w_rel_p = jnp.zeros((Dp, Do), f32).at[:Din, :Dout].set(params["w_rel"].astype(f32))

    bias_p = jnp.zeros((1, Do), f32).at[0, :Dout].set(params["bias"].astype(f32))
    gamma_p = jnp.zeros((1, Do), f32).at[0, :Dout].set(params["bn_gamma"].astype(f32))
    beta_p = jnp.zeros((1, Do), f32).at[0, :Dout].set(params["bn_beta"].astype(f32))

    def full(shape):
        return pl.BlockSpec(shape, lambda t: (0,) * len(shape))

    grid_spec = pltpu.PrefetchScalarGridSpec(
        num_scalar_prefetch=0,
        grid=(n_tiles,),
        in_specs=[
            pl.BlockSpec((edge_tile, 1), lambda t: (t, 0)),    # src per edge tile
            pl.BlockSpec((edge_tile, Dp), lambda t: (t, 0)),   # alpha-scaled xjrel (bf16)
            full((N, Dp)), full((R1, Dp)),
            full((Dp, Do)), full((Dp, Do)), full((Dp, Do)),
            full((1, Dp)),
            full((N, 1)),
            full((1, Do)), full((1, Do)), full((1, Do)),
        ],
        out_specs=(full((N, Do)), full((R, Do))),
    )

    # VMEM budget: f32 residents + bf16 w_out + double-buffered streamed tiles
    # + outputs; 2x headroom, capped at ~80% of physical VMEM for this chip
    # (~51 MiB on v7x, ~102 MiB on v5e/v6e).
    est_bytes = (
        4 * (N * Dp + R1 * Dp + 2 * Dp * Do + Dp + N + 3 * Do
             + N * Do + R * Do)
        + 2 * Dp * Do
        + 2 * (4 * edge_tile + 2 * edge_tile * Dp)
    )
    try:
        phys_vmem = int(getattr(pltpu.get_tpu_info(), "vmem_capacity_bytes",
                                64 << 20))
    except Exception:
        phys_vmem = 64 << 20
    vmem_limit = int(min(max(2 * est_bytes, 16 << 20), phys_vmem * 4 // 5))

    node_out, rel_out = pl.pallas_call(
        functools.partial(_compgcn_kernel, alpha_col),
        out_shape=(jax.ShapeDtypeStruct((N, Do), f32),
                   jax.ShapeDtypeStruct((R, Do), f32)),
        grid_spec=grid_spec,
        compiler_params=pltpu.CompilerParams(
            dimension_semantics=("arbitrary",),   # edge axis carries the accumulator
            vmem_limit_bytes=vmem_limit),
    )(src_col, xjrel_aug, ent_p, rel_p,
      w_out_p, w_loop_p, w_rel_p, loop_rel_p,
      inv_deg, bias_p, gamma_p, beta_p)

    return node_out[:, :Dout], rel_out[:, :Dout]


def compgcn_reference(edge_index, edge_type, query_type, ent, rel, params):
    """Plain-JAX translation of the PyTorch forward (for verification)."""
    N, Din = ent.shape
    Dout = params["w_out"].shape[1]
    rel_full = jnp.concatenate([rel, params["loop_rel"]], axis=0)
    src = edge_index[0] % N
    dst = edge_index[1] % N
    deg = jnp.zeros((N,), jnp.float32).at[src].add(1.0)
    norm = 1.0 / deg[src]
    norm = jnp.where(jnp.isinf(norm), 0.0, norm)

    loop_res = (ent * params["loop_rel"]) @ params["w_loop"]

    x_j = ent[dst]
    rel_emb = rel_full[edge_type]
    query_emb = rel_full[query_type]
    Wr = rel_emb @ params["W_w"].T + params["W_b"]
    Wq = query_emb @ params["W_w"].T + params["W_b"]
    a_pre = jnp.concatenate([Wr, Wq], axis=-1) @ params["a_w"].T + params["a_b"]
    alpha = jnp.exp(jax.nn.leaky_relu(a_pre, 0.01))
    sum_alpha = jnp.zeros((N, 1), jnp.float32).at[src].add(alpha)
    alpha = alpha / sum_alpha[src]
    msg = (x_j * rel_emb) @ params["w_out"]
    msg = msg * alpha * norm[:, None]
    out_res = jnp.zeros((N, Dout), jnp.float32).at[src].add(msg)

    out = 0.5 * out_res + 0.5 * loop_res + params["bias"]
    mean = out.mean(0, keepdims=True)
    var = ((out - mean) ** 2).mean(0, keepdims=True)
    out = (out - mean) / jnp.sqrt(var + 1e-5) * params["bn_gamma"] + params["bn_beta"]
    return jax.nn.leaky_relu(out, 0.01), (rel_full @ params["w_rel"])[:-1]


def init_params(key, in_channels, out_channels):
    ks = jax.random.split(key, 8)

    def xavier(k, shape):
        fan_in, fan_out = shape[-2], shape[-1]
        std = (2.0 / (fan_in + fan_out)) ** 0.5
        return std * jax.random.normal(k, shape, jnp.float32)

    return {
        "w_loop": xavier(ks[0], (in_channels, out_channels)),
        "w_out": xavier(ks[1], (in_channels, out_channels)),
        "w_rel": xavier(ks[2], (in_channels, out_channels)),
        "loop_rel": xavier(ks[3], (1, in_channels)),
        "W_w": xavier(ks[4], (in_channels, in_channels)),        # nn.Linear weight (out, in)
        "W_b": 0.1 * jax.random.normal(ks[6], (in_channels,), jnp.float32),
        "a_w": xavier(ks[5], (1, 2 * in_channels)),              # nn.Linear weight (1, 2*in)
        "a_b": 0.1 * jax.random.normal(ks[7], (1,), jnp.float32),
        "bias": jnp.zeros((out_channels,), jnp.float32),
        "bn_gamma": jnp.ones((out_channels,), jnp.float32),
        "bn_beta": jnp.zeros((out_channels,), jnp.float32),
    }


if __name__ == "__main__":
    key = jax.random.PRNGKey(0)
    k_ent, k_rel, k_ei, k_et, k_qt, k_par = jax.random.split(key, 6)

    num_ent, num_rel = 64, 8
    in_channels, out_channels = 32, 32
    num_edges = 1000                 # 4 edge tiles of 256: init / accumulate / finalize

    entity_embed = jax.random.normal(k_ent, (num_ent, in_channels), jnp.float32)
    rel_embed = jax.random.normal(k_rel, (num_rel, in_channels), jnp.float32)
    edge_index = jax.random.randint(k_ei, (2, num_edges), 0, num_ent, jnp.int32)
    edge_type = jax.random.randint(k_et, (num_edges,), 0, num_rel, jnp.int32)
    query_type = jax.random.randint(k_qt, (num_edges,), 0, num_rel, jnp.int32)

    params = init_params(k_par, in_channels, out_channels)

    node_out, rel_out = compgcn_forward(edge_index, edge_type, query_type,
                                        entity_embed, rel_embed, params,
                                        edge_tile=256)   # small demo: multiple grid steps
    jax.block_until_ready((node_out, rel_out))

    node_ref, rel_ref_out = compgcn_reference(edge_index, edge_type, query_type,
                                              entity_embed, rel_embed, params)
    assert node_out.shape == (num_ent, out_channels)
    assert rel_out.shape == (num_rel, out_channels)
    # bf16 MXU operands on the scatter path -> slightly looser node tolerance.
    assert jnp.allclose(node_out, node_ref, rtol=2e-2, atol=2e-2), "node output mismatch"
    assert jnp.allclose(rel_out, rel_ref_out, rtol=5e-3, atol=5e-3), "relation output mismatch"

    print("KERNEL_OK")
</pallas_src>

<mosaic_0001>
module attributes {stable_mosaic.version = 11 : i64} {
  func.func @_compgcn_kernel(%arg0: i32, %arg1: memref<256x1xi32, #tpu.memory_space<vmem>>, %arg2: memref<256x128xbf16, #tpu.memory_space<vmem>>, %arg3: memref<64x128xf32, #tpu.memory_space<vmem>>, %arg4: memref<9x128xf32, #tpu.memory_space<vmem>>, %arg5: memref<128x128xbf16, #tpu.memory_space<vmem>>, %arg6: memref<128x128xf32, #tpu.memory_space<vmem>>, %arg7: memref<128x128xf32, #tpu.memory_space<vmem>>, %arg8: memref<1x128xf32, #tpu.memory_space<vmem>>, %arg9: memref<64x1xf32, #tpu.memory_space<vmem>>, %arg10: memref<1x128xf32, #tpu.memory_space<vmem>>, %arg11: memref<1x128xf32, #tpu.memory_space<vmem>>, %arg12: memref<1x128xf32, #tpu.memory_space<vmem>>, %arg13: memref<64x128xf32, #tpu.memory_space<vmem>>, %arg14: memref<8x128xf32, #tpu.memory_space<vmem>>) attributes {dimension_semantics = [#tpu.dimension_semantics<arbitrary>], iteration_bounds = array<i64: 4>, scalar_prefetch = 0 : i64, scratch_operands = 0 : i64, tpu.core_type = #tpu.core_type<tc>, window_params = [{transform_indices = @transform_0, window_bounds = array<i64: 256, 1>}, {transform_indices = @transform_1, window_bounds = array<i64: 256, 128>}, {pipeline_mode = #tpu.pipeline_mode<synchronous>, transform_indices = @transform_2, window_bounds = array<i64: 64, 128>}, {pipeline_mode = #tpu.pipeline_mode<synchronous>, transform_indices = @transform_3, window_bounds = array<i64: 9, 128>}, {pipeline_mode = #tpu.pipeline_mode<synchronous>, transform_indices = @transform_4, window_bounds = array<i64: 128, 128>}, {pipeline_mode = #tpu.pipeline_mode<synchronous>, transform_indices = @transform_5, window_bounds = array<i64: 128, 128>}, {pipeline_mode = #tpu.pipeline_mode<synchronous>, transform_indices = @transform_6, window_bounds = array<i64: 128, 128>}, {pipeline_mode = #tpu.pipeline_mode<synchronous>, transform_indices = @transform_7, window_bounds = array<i64: 1, 128>}, {pipeline_mode = #tpu.pipeline_mode<synchronous>, transform_indices = @transform_8, window_bounds = array<i64: 64, 1>}, {pipeline_mode = #tpu.pipeline_mode<synchronous>, transform_indices = @transform_9, window_bounds = array<i64: 1, 128>}, {pipeline_mode = #tpu.pipeline_mode<synchronous>, transform_indices = @transform_10, window_bounds = array<i64: 1, 128>}, {pipeline_mode = #tpu.pipeline_mode<synchronous>, transform_indices = @transform_11, window_bounds = array<i64: 1, 128>}, {pipeline_mode = #tpu.pipeline_mode<synchronous>, transform_indices = @transform_12, window_bounds = array<i64: 64, 128>}, {pipeline_mode = #tpu.pipeline_mode<synchronous>, transform_indices = @transform_13, window_bounds = array<i64: 8, 128>}]} {
    %c0_i32 = arith.constant 0 : i32
    %0 = arith.cmpi eq, %arg0, %c0_i32 : i32
    %1 = arith.extui %0 : i1 to i32
    %c0_i32_0 = arith.constant 0 : i32
    %2 = arith.cmpi ne, %1, %c0_i32_0 : i32
    scf.if %2 {
      %cst_12 = arith.constant 0.000000e+00 : f32
      %21 = vector.broadcast %cst_12 : f32 to vector<64x128xf32>
      %c0_13 = arith.constant 0 : index
      %c0_14 = arith.constant 0 : index
      %22 = vector.load %arg13[%c0_13, %c0_14] : memref<64x128xf32, #tpu.memory_space<vmem>>, vector<64x128xf32>
      tpu.vector_store %arg13[%c0_13, %c0_14], %21 {strides = array<i32>} : memref<64x128xf32, #tpu.memory_space<vmem>>, vector<64x128xf32>,
    } else {
    }
    %c0 = arith.constant 0 : index
    %c0_1 = arith.constant 0 : index
    %3 = vector.load %arg2[%c0, %c0_1] : memref<256x128xbf16, #tpu.memory_space<vmem>>, vector<256x128xbf16>
    %c0_2 = arith.constant 0 : index
    %c0_3 = arith.constant 0 : index
    %4 = vector.load %arg5[%c0_2, %c0_3] : memref<128x128xbf16, #tpu.memory_space<vmem>>, vector<128x128xbf16>
    %cst = arith.constant dense<0.000000e+00> : vector<256x128xf32>
    %5 = tpu.matmul %3, %4, %cst {dimension_numbers = #tpu.dot_dimension_numbers<[1], [0], [0], [1], [0, 0, 1, 1], [], []>} : vector<256x128xbf16>, vector<128x128xbf16>, vector<256x128xf32> -> vector<256x128xf32>
    %6 = tpu.iota {dimensions = array<i32: 1>} : vector<256x64xi32>
    %c0_4 = arith.constant 0 : index
    %c0_5 = arith.constant 0 : index
    %7 = vector.load %arg1[%c0_4, %c0_5] : memref<256x1xi32, #tpu.memory_space<vmem>>, vector<256x1xi32>
    %8 = vector.broadcast %7 : vector<256x1xi32> to vector<256x64xi32>
    %9 = arith.cmpi eq, %8, %6 : vector<256x64xi32>
    %10 = arith.extui %9 : vector<256x64xi1> to vector<256x64xi32>
    %11 = arith.sitofp %10 : vector<256x64xi32> to vector<256x64xf32>
    %12 = arith.truncf %11 : vector<256x64xf32> to vector<256x64xbf16>
    %c0_6 = arith.constant 0 : index
    %c0_7 = arith.constant 0 : index
    %13 = vector.load %arg13[%c0_6, %c0_7] : memref<64x128xf32, #tpu.memory_space<vmem>>, vector<64x128xf32>
    %14 = arith.truncf %5 : vector<256x128xf32> to vector<256x128xbf16>
    %cst_8 = arith.constant dense<0.000000e+00> : vector<64x128xf32>
    %15 = tpu.matmul %12, %14, %cst_8 {dimension_numbers = #tpu.dot_dimension_numbers<[0], [0], [1], [1], [0, 1, 1, 1], [], []>} : vector<256x64xbf16>, vector<256x128xbf16>, vector<64x128xf32> -> vector<64x128xf32>
    %16 = arith.addf %13, %15 : vector<64x128xf32>
    %c0_9 = arith.constant 0 : index
    %c0_10 = arith.constant 0 : index
    %17 = vector.load %arg13[%c0_9, %c0_10] : memref<64x128xf32, #tpu.memory_space<vmem>>, vector<64x128xf32>
    tpu.vector_store %arg13[%c0_9, %c0_10], %16 {strides = array<i32>} : memref<64x128xf32, #tpu.memory_space<vmem>>, vector<64x128xf32>,
    %c3_i32 = arith.constant 3 : i32
    %18 = arith.cmpi eq, %arg0, %c3_i32 : i32
    %19 = arith.extui %18 : i1 to i32
    %c0_i32_11 = arith.constant 0 : i32
    %20 = arith.cmpi ne, %19, %c0_i32_11 : i32
    scf.if %20 {
      %c0_12 = arith.constant 0 : index
      %c0_13 = arith.constant 0 : index
      %21 = vector.load %arg13[%c0_12, %c0_13] : memref<64x128xf32, #tpu.memory_space<vmem>>, vector<64x128xf32>
      %22 = vector.extract_strided_slice %21 {offsets = [0, 32], sizes = [64, 1], strides = [1, 1]} : vector<64x128xf32> to vector<64x1xf32>
      %c0_14 = arith.constant 0 : index
      %c0_15 = arith.constant 0 : index
      %23 = vector.load %arg9[%c0_14, %c0_15] : memref<64x1xf32, #tpu.memory_space<vmem>>, vector<64x1xf32>
      %cst_16 = arith.constant 0.000000e+00 : f32
      %24 = vector.broadcast %cst_16 : f32 to vector<64x1xf32>
      %25 = arith.cmpf ogt, %22, %24 : vector<64x1xf32>
      %cst_17 = arith.constant 1.000000e-30 : f32
      %26 = vector.broadcast %cst_17 : f32 to vector<64x1xf32>
      %27 = arith.maximumf %22, %26 : vector<64x1xf32>
      %cst_18 = arith.constant 1.000000e+00 : f32
      %28 = vector.broadcast %cst_18 : f32 to vector<64x1xf32>
      %29 = arith.divf %28, %27 : vector<64x1xf32>
      %cst_19 = arith.constant 0.000000e+00 : f32
      %30 = vector.broadcast %cst_19 : f32 to vector<64x1xf32>
      %31 = arith.select %25, %29, %30 : vector<64x1xi1>, vector<64x1xf32>
      %32 = arith.mulf %23, %31 : vector<64x1xf32>
      %c0_20 = arith.constant 0 : index
      %c0_21 = arith.constant 0 : index
      %33 = vector.load %arg3[%c0_20, %c0_21] : memref<64x128xf32, #tpu.memory_space<vmem>>, vector<64x128xf32>
      %c0_22 = arith.constant 0 : index
      %c0_23 = arith.constant 0 : index
      %34 = vector.load %arg8[%c0_22, %c0_23] : memref<1x128xf32, #tpu.memory_space<vmem>>, vector<1x128xf32>
      %35 = vector.broadcast %34 : vector<1x128xf32> to vector<64x128xf32>
      %36 = arith.mulf %33, %35 : vector<64x128xf32>
      %c0_24 = arith.constant 0 : index
      %c0_25 = arith.constant 0 : index
      %37 = vector.load %arg6[%c0_24, %c0_25] : memref<128x128xf32, #tpu.memory_space<vmem>>, vector<128x128xf32>
      %cst_26 = arith.constant dense<0.000000e+00> : vector<64x128xf32>
      %38 = tpu.matmul %36, %37, %cst_26 {dimension_numbers = #tpu.dot_dimension_numbers<[1], [0], [0], [1], [0, 0, 1, 1], [], []>} : vector<64x128xf32>, vector<128x128xf32>, vector<64x128xf32> -> vector<64x128xf32>
      %cst_27 = arith.constant 5.000000e-01 : f32
      %39 = vector.broadcast %cst_27 : f32 to vector<64x128xf32>
      %40 = arith.mulf %39, %21 : vector<64x128xf32>
      %41 = vector.broadcast %32 : vector<64x1xf32> to vector<64x128xf32>
      %42 = arith.mulf %40, %41 : vector<64x128xf32>
      %cst_28 = arith.constant 5.000000e-01 : f32
      %43 = vector.broadcast %cst_28 : f32 to vector<64x128xf32>
      %44 = arith.mulf %43, %38 : vector<64x128xf32>
      %45 = arith.addf %42, %44 : vector<64x128xf32>
      %c0_29 = arith.constant 0 : index
      %c0_30 = arith.constant 0 : index
      %46 = vector.load %arg10[%c0_29, %c0_30] : memref<1x128xf32, #tpu.memory_space<vmem>>, vector<1x128xf32>
      %47 = vector.broadcast %46 : vector<1x128xf32> to vector<64x128xf32>
      %48 = arith.addf %45, %47 : vector<64x128xf32>
      %cst_31 = arith.constant dense<0.000000e+00> : vector<128xf32>
      %49 = vector.multi_reduction <add>, %48, %cst_31 [0] : vector<64x128xf32> to vector<128xf32>
      %50 = vector.shape_cast %49 : vector<128xf32> to vector<1x128xf32>
      %cst_32 = arith.constant 6.400000e+01 : f32
      %51 = vector.broadcast %cst_32 : f32 to vector<1x128xf32>
      %52 = arith.divf %50, %51 : vector<1x128xf32>
      %53 = vector.broadcast %52 : vector<1x128xf32> to vector<64x128xf32>
      %54 = arith.subf %48, %53 : vector<64x128xf32>
      %55 = arith.mulf %54, %54 : vector<64x128xf32>
      %cst_33 = arith.constant dense<0.000000e+00> : vector<128xf32>
      %56 = vector.multi_reduction <add>, %55, %cst_33 [0] : vector<64x128xf32> to vector<128xf32>
      %57 = vector.shape_cast %56 : vector<128xf32> to vector<1x128xf32>
      %cst_34 = arith.constant 6.400000e+01 : f32
      %58 = vector.broadcast %cst_34 : f32 to vector<1x128xf32>
      %59 = arith.divf %57, %58 : vector<1x128xf32>
      %60 = vector.broadcast %52 : vector<1x128xf32> to vector<64x128xf32>
      %61 = arith.subf %48, %60 : vector<64x128xf32>
      %cst_35 = arith.constant 9.99999974E-6 : f32
      %62 = vector.broadcast %cst_35 : f32 to vector<1x128xf32>
      %63 = arith.addf %59, %62 : vector<1x128xf32>
      %64 = math.rsqrt %63 : vector<1x128xf32>
      %65 = vector.broadcast %64 : vector<1x128xf32> to vector<64x128xf32>
      %66 = arith.mulf %61, %65 : vector<64x128xf32>
      %c0_36 = arith.constant 0 : index
      %c0_37 = arith.constant 0 : index
      %67 = vector.load %arg11[%c0_36, %c0_37] : memref<1x128xf32, #tpu.memory_space<vmem>>, vector<1x128xf32>
      %68 = vector.broadcast %67 : vector<1x128xf32> to vector<64x128xf32>
      %69 = arith.mulf %66, %68 : vector<64x128xf32>
      %c0_38 = arith.constant 0 : index
      %c0_39 = arith.constant 0 : index
      %70 = vector.load %arg12[%c0_38, %c0_39] : memref<1x128xf32, #tpu.memory_space<vmem>>, vector<1x128xf32>
      %71 = vector.broadcast %70 : vector<1x128xf32> to vector<64x128xf32>
      %72 = arith.addf %69, %71 : vector<64x128xf32>
      %cst_40 = arith.constant 0.000000e+00 : f32
      %73 = vector.broadcast %cst_40 : f32 to vector<64x128xf32>
      %74 = arith.cmpf oge, %72, %73 : vector<64x128xf32>
      %cst_41 = arith.constant 0.00999999977 : f32
      %75 = vector.broadcast %cst_41 : f32 to vector<64x128xf32>
      %76 = arith.mulf %75, %72 : vector<64x128xf32>
      %77 = arith.select %74, %72, %76 : vector<64x128xi1>, vector<64x128xf32>
      %c0_42 = arith.constant 0 : index
      %c0_43 = arith.constant 0 : index
      %78 = vector.load %arg13[%c0_42, %c0_43] : memref<64x128xf32, #tpu.memory_space<vmem>>, vector<64x128xf32>
      tpu.vector_store %arg13[%c0_42, %c0_43], %77 {strides = array<i32>} : memref<64x128xf32, #tpu.memory_space<vmem>>, vector<64x128xf32>,
      %c0_44 = arith.constant 0 : index
      %c0_45 = arith.constant 0 : index
      %79 = vector.load %arg4[%c0_44, %c0_45] : memref<9x128xf32, #tpu.memory_space<vmem>>, vector<9x128xf32>
      %80 = vector.extract_strided_slice %79 {offsets = [0, 0], sizes = [8, 128], strides = [1, 1]} : vector<9x128xf32> to vector<8x128xf32>
      %c0_46 = arith.constant 0 : index
      %c0_47 = arith.constant 0 : index
      %81 = vector.load %arg7[%c0_46, %c0_47] : memref<128x128xf32, #tpu.memory_space<vmem>>, vector<128x128xf32>
      %cst_48 = arith.constant dense<0.000000e+00> : vector<8x128xf32>
      %82 = tpu.matmul %80, %81, %cst_48 {dimension_numbers = #tpu.dot_dimension_numbers<[1], [0], [0], [1], [0, 0, 1, 1], [], []>} : vector<8x128xf32>, vector<128x128xf32>, vector<8x128xf32> -> vector<8x128xf32>
      %c0_49 = arith.constant 0 : index
      %c0_50 = arith.constant 0 : index
      %83 = vector.load %arg14[%c0_49, %c0_50] : memref<8x128xf32, #tpu.memory_space<vmem>>, vector<8x128xf32>
      tpu.vector_store %arg14[%c0_49, %c0_50], %82 {strides = array<i32>} : memref<8x128xf32, #tpu.memory_space<vmem>>, vector<8x128xf32>,
    } else {
    }
    return
  }
  func.func @transform_0(%arg0: i32) -> (i32, i32) {
    %c0_i32 = arith.constant 0 : i32
    %c0_i32_0 = arith.constant 0 : i32
    return %arg0, %c0_i32 : i32, i32
  }
  func.func @transform_1(%arg0: i32) -> (i32, i32) {
    %c0_i32 = arith.constant 0 : i32
    %c0_i32_0 = arith.constant 0 : i32
    return %arg0, %c0_i32 : i32, i32
  }
  func.func @transform_2(%arg0: i32) -> (i32, i32) {
    %c0_i32 = arith.constant 0 : i32
    %c0_i32_0 = arith.constant 0 : i32
    %c0_i32_1 = arith.constant 0 : i32
    return %c0_i32, %c0_i32_0 : i32, i32
  }
  func.func @transform_3(%arg0: i32) -> (i32, i32) {
    %c0_i32 = arith.constant 0 : i32
    %c0_i32_0 = arith.constant 0 : i32
    %c0_i32_1 = arith.constant 0 : i32
    return %c0_i32, %c0_i32_0 : i32, i32
  }
  func.func @transform_4(%arg0: i32) -> (i32, i32) {
    %c0_i32 = arith.constant 0 : i32
    %c0_i32_0 = arith.constant 0 : i32
    %c0_i32_1 = arith.constant 0 : i32
    return %c0_i32, %c0_i32_0 : i32, i32
  }
  func.func @transform_5(%arg0: i32) -> (i32, i32) {
    %c0_i32 = arith.constant 0 : i32
    %c0_i32_0 = arith.constant 0 : i32
    %c0_i32_1 = arith.constant 0 : i32
    return %c0_i32, %c0_i32_0 : i32, i32
  }
  func.func @transform_6(%arg0: i32) -> (i32, i32) {
    %c0_i32 = arith.constant 0 : i32
    %c0_i32_0 = arith.constant 0 : i32
    %c0_i32_1 = arith.constant 0 : i32
    return %c0_i32, %c0_i32_0 : i32, i32
  }
  func.func @transform_7(%arg0: i32) -> (i32, i32) {
    %c0_i32 = arith.constant 0 : i32
    %c0_i32_0 = arith.constant 0 : i32
    %c0_i32_1 = arith.constant 0 : i32
    return %c0_i32, %c0_i32_0 : i32, i32
  }
  func.func @transform_8(%arg0: i32) -> (i32, i32) {
    %c0_i32 = arith.constant 0 : i32
    %c0_i32_0 = arith.constant 0 : i32
    %c0_i32_1 = arith.constant 0 : i32
    return %c0_i32, %c0_i32_0 : i32, i32
  }
  func.func @transform_9(%arg0: i32) -> (i32, i32) {
    %c0_i32 = arith.constant 0 : i32
    %c0_i32_0 = arith.constant 0 : i32
    %c0_i32_1 = arith.constant 0 : i32
    return %c0_i32, %c0_i32_0 : i32, i32
  }
  func.func @transform_10(%arg0: i32) -> (i32, i32) {
    %c0_i32 = arith.constant 0 : i32
    %c0_i32_0 = arith.constant 0 : i32
    %c0_i32_1 = arith.constant 0 : i32
    return %c0_i32, %c0_i32_0 : i32, i32
  }
  func.func @transform_11(%arg0: i32) -> (i32, i32) {
    %c0_i32 = arith.constant 0 : i32
    %c0_i32_0 = arith.constant 0 : i32
    %c0_i32_1 = arith.constant 0 : i32
    return %c0_i32, %c0_i32_0 : i32, i32
  }
  func.func @transform_12(%arg0: i32) -> (i32, i32) {
    %c0_i32 = arith.constant 0 : i32
    %c0_i32_0 = arith.constant 0 : i32
    %c0_i32_1 = arith.constant 0 : i32
    return %c0_i32, %c0_i32_0 : i32, i32
  }
  func.func @transform_13(%arg0: i32) -> (i32, i32) {
    %c0_i32 = arith.constant 0 : i32
    %c0_i32_0 = arith.constant 0 : i32
    %c0_i32_1 = arith.constant 0 : i32
    return %c0_i32, %c0_i32_0 : i32, i32
  }
}

</mosaic_0001>

<bundles_post_ra>
// kernel: tpu_custom_call.1
= control target key start
LH: loop header
LB: loop body
LE: loop exit
PB: predicated region body
PF: predicated region fallthrough
CT: control target
= control target key end

     0   :  { %19 = vsyncpa [#allocation3], 0  ;;  %s2837_s0 = inlined_call_operand.vmem [shape: s32[1024,1], index: 0, kind: input, shape index: {}]   ;;  %s2838_s1 = inlined_call_operand.vmem [shape: bf16[1024,128], index: 1, kind: input, shape index: {}]   ;;  %s2839_s2 = inlined_call_operand.vmem [shape: f32[64,128], index: 2, kind: input, shape index: {}]   ;;  %s2840_s3 = inlined_call_operand.vmem [shape: f32[9,128], index: 3, kind: input, shape index: {}]   ;;  %s2841_s4 = inlined_call_operand.vmem [shape: bf16[128,128], index: 4, kind: input, shape index: {}]   ;;  %s2842_s5 = inlined_call_operand.vmem [shape: f32[128,128], index: 5, kind: input, shape index: {}]   ;;  %s2843_s6 = inlined_call_operand.vmem [shape: f32[128,128], index: 6, kind: input, shape index: {}]   ;;  %s2844_s7 = inlined_call_operand.vmem [shape: f32[1,128], index: 7, kind: input, shape index: {}]   ;;  %s2845_s8 = inlined_call_operand.vmem [shape: f32[64,1], index: 8, kind: input, shape index: {}]   ;;  %s2846_s9 = inlined_call_operand.vmem [shape: f32[1,128], index: 9, kind: input, shape index: {}]   ;;  %s2847_s10 = inlined_call_operand.vmem [shape: f32[1,128], index: 10, kind: input, shape index: {}]   ;;  %s2848_s11 = inlined_call_operand.vmem [shape: f32[1,128], index: 11, kind: input, shape index: {}]   ;;  %s2849_s12 = inlined_call_operand.hbm [shape: f32[64,128], index: 12, kind: output, shape index: {0}]   ;;  %s2850_s13 = inlined_call_operand.hbm [shape: f32[8,128], index: 13, kind: output, shape index: {1}]  }
   0x1   :  { %20 = vsyncpa [#allocation5], 0  ;;  %s2240_s25 = smov 0  }
   0x2 LB: > { %s2246_s26 = sadd.s32 4294967295, %s2156_s25   ;;  %p1733_p0 = scmp.ge.s32.totalorder %s2156_s25, 1  ;;  %s2156_s25 = sphi %s2240_s25, %s26_s25  }
   0x3   : > { %p394_p1 = scmp.lt.s32.totalorder %s2156_s25, 5 }
   0x5   : > { %p395_p2 = pnand %p1733_p0, %p394_p1 }
   0x6   : > { %s1734_s27 = sshll.u32 (!%p395_p2), %s2246_s26, 5  ;;  %p1738_p4 = scmp.ne.s32.totalorder (!%p395_p2), %s2246_s26, 0 }
   0x7   : > { %398 = sbr.rel (%p395_p2) target bundleno = 884 (0x374), region = 68  ;;  %p439_p3 = scmp.lt.s32.totalorder (!%p395_p2), %s1734_s27, 127 }
   0xc   : > { %s2880_s27 = smov (!%p439_p3, %s1734_s27), 127  ;;  %453 = sbr.rel (%p1738_p4) target bundleno = 26 (0x1a), region = 72 }
   0xd   : > { %s1735_s28 = sshll.u32 %s2880_s27, 3  ;;  %s1737_s29 = sshll.u32 %s2880_s27, 2 }
   0xe   : > { %s2254_s15 = scalar_lea.vmem %s2837_s0, %s1735_s28  ;;  %s2259_s18 = scalar_lea.vmem %s2838_s1, %s1737_s29 }
  0x11   : > { %v2158_v0 = vmov 0.0  }
  0x12   : > { %454 = vst [vmem:[#allocation2] sm:$0xff] %v2158_v0 }
  0x13   : > { %455 = vst [vmem:[#allocation2 + $0x8] sm:$0xff] %v2158_v0 }
  0x14   : > { %456 = vst [vmem:[#allocation2 + $0x10] sm:$0xff] %v2158_v0 }
  0x15   : > { %457 = vst [vmem:[#allocation2 + $0x18] sm:$0xff] %v2158_v0 }
  0x16   : > { %458 = vst [vmem:[#allocation2 + $0x20] sm:$0xff] %v2158_v0 }
  0x17   : > { %459 = vst [vmem:[#allocation2 + $0x28] sm:$0xff] %v2158_v0 }
  0x18   : > { %460 = vst [vmem:[#allocation2 + $0x30] sm:$0xff] %v2158_v0 }
  0x19   : > { %461 = vst [vmem:[#allocation2 + $0x38] sm:$0xff] %v2158_v0 }
  0x1a PF: > { %v775_v1 = vld [vmem:[%s2254_s15 + $0xf0] sm:$0xff]  ;;  %v773_v2 = vld [vmem:[%s2254_s15 + $0xe0] sm:$0xff]  ;;  %v1897_v3 = vld [vmem:[%s2841_s4 + $0x38] sm:$0xff]  ;;  %v2159_v4 = vmov 0   ;;  %v743_v60 = vlaneseq  ;;  %p1867_p5 = scmp.ne.s32.totalorder %s2246_s26, 3 }
  0x1b   : > { %2057 = vset.pattern.permute.xlu1 %v2159_v4  ;;  %2056 = vset.pattern.permute.xlu0 %v2159_v4  ;;  %v1896_v5 = vld [vmem:[%s2841_s4 + $0x30] sm:$0xff]  ;;  %v776_v7 = vld [vmem:[%s2254_s15 + $0xf8] sm:$0xff]  ;;  %v774_v8 = vld [vmem:[%s2254_s15 + $0xe8] sm:$0xff]  ;;  %s2161_s30 = smov (!%p1867_p5), 96  }
  0x1c   : > { %868 = vperm.xlu0 %2056, %v775_v1   ;;  %862 = vperm.xlu1 %2057, %v773_v2   ;;  %v759_v6 = vld [vmem:[%s2254_s15 + $0x70] sm:$0xff]  ;;  %v1895_v9 = vld [vmem:[%s2841_s4 + $0x28] sm:$0xff]  ;;  %v760_v10 = vld [vmem:[%s2254_s15 + $0x78] sm:$0xff]  ;;  %v2334_v0 = vand.u32 127, %v743_v60 }
  0x1d   : > { %654 = vmatpush.bf16.msra.mxu0 %v1897_v3  ;;  %1900 = vmatpush.bf16.msra.mxu3 %v1897_v3  ;;  %v1894_v11 = vld [vmem:[%s2841_s4 + $0x20] sm:$0xff]  ;;  %v772_v12 = vld [vmem:[%s2254_s15 + $0xd8] sm:$0xff]  ;;  %v771_v13 = vld [vmem:[%s2254_s15 + $0xd0] sm:$0xff] }
  0x1e   : > { %2058 = vset.pattern.permute.xlu2 %v2159_v4  ;;  %1898 = vmatpush.bf16.msra.mxu1 %v1897_v3  ;;  %v1893_v14 = vld [vmem:[%s2841_s4 + $0x18] sm:$0xff]  ;;  %v757_v15 = vld [vmem:[%s2254_s15 + $0x60] sm:$0xff]  ;;  %v1892_v16 = vld [vmem:[%s2841_s4 + $0x10] sm:$0xff]  ;;  %v2160_v4 = vmov 1.0|1.0  }
  0x1f   : > { %820 = vperm.xlu2 %2058, %v759_v6   ;;  %1899 = vmatpush.bf16.msra.mxu2 %v1897_v3  ;;  %v769_v17 = vld [vmem:[%s2254_s15 + $0xc0] sm:$0xff]  ;;  %v758_v18 = vld [vmem:[%s2254_s15 + $0x68] sm:$0xff]  ;;  %v756_v22 = vld [vmem:[%s2254_s15 + $0x58] sm:$0xff] }
  0x20   : > { %v1891_v19 = vld [vmem:[%s2841_s4 + $0x8] sm:$0xff]  ;;  %v1890_v21 = vld [vmem:[%s2841_s4] sm:$0xff]  ;;  %v755_v23 = vld [vmem:[%s2254_s15 + $0x50] sm:$0xff] }
  0x21   : > { %655 = vmatpush.bf16.msra.mxu0 %v1896_v5  ;;  %1903 = vmatpush.bf16.msra.mxu3 %v1896_v5  ;;  %v770_v20 = vld [vmem:[%s2254_s15 + $0xc8] sm:$0xff]  ;;  %v1874_v24 = vld [vmem:[%s2259_s18] sm:$0xff]  ;;  %v1884_v25 = vld [vmem:[%s2259_s18 + $0x50] sm:$0xff] }
  0x22   : > { %1901 = vmatpush.bf16.msra.mxu1 %v1896_v5  ;;  %v767_v26 = vld [vmem:[%s2254_s15 + $0xb0] sm:$0xff]  ;;  %v768_v27 = vld [vmem:[%s2254_s15 + $0xb8] sm:$0xff]  ;;  %v753_v28 = vld [vmem:[%s2254_s15 + $0x40] sm:$0xff] }
  0x23   : > { %1902 = vmatpush.bf16.msra.mxu2 %v1896_v5  ;;  %v754_v29 = vld [vmem:[%s2254_s15 + $0x48] sm:$0xff]  ;;  %v765_v30 = vld [vmem:[%s2254_s15 + $0xa0] sm:$0xff]  ;;  %v1885_v33 = vld [vmem:[%s2259_s18 + $0x58] sm:$0xff] }
  0x24   : > { %871 = vperm.xlu0 %2056, %v776_v7   ;;  %865 = vperm.xlu1 %2057, %v774_v8   ;;  %v766_v31 = vld [vmem:[%s2254_s15 + $0xa8] sm:$0xff]  ;;  %v1880_v34 = vld [vmem:[%s2259_s18 + $0x30] sm:$0xff]  ;;  %v752_v37 = vld [vmem:[%s2254_s15 + $0x38] sm:$0xff] }
  0x25   : > { %656 = vmatpush.bf16.msra.mxu0 %v1895_v9  ;;  %1906 = vmatpush.bf16.msra.mxu3 %v1895_v9  ;;  %v1875_v32 = vld [vmem:[%s2259_s18 + $0x8] sm:$0xff]  ;;  %v751_v35 = vld [vmem:[%s2254_s15 + $0x30] sm:$0xff]  ;;  %v764_v38 = vld [vmem:[%s2254_s15 + $0x98] sm:$0xff] }
  0x26   : > { %1904 = vmatpush.bf16.msra.mxu1 %v1895_v9  ;;  %v763_v36 = vld [vmem:[%s2254_s15 + $0x90] sm:$0xff]  ;;  %v750_v39 = vld [vmem:[%s2254_s15 + $0x28] sm:$0xff]  ;;  %v749_v40 = vld [vmem:[%s2254_s15 + $0x20] sm:$0xff] }
  0x27   : > { %823 = vperm.xlu2 %2058, %v760_v10   ;;  %1905 = vmatpush.bf16.msra.mxu2 %v1895_v9  ;;  %v1876_v41 = vld [vmem:[%s2259_s18 + $0x10] sm:$0xff]  ;;  %v1886_v42 = vld [vmem:[%s2259_s18 + $0x60] sm:$0xff]  ;;  %v1881_v43 = vld [vmem:[%s2259_s18 + $0x38] sm:$0xff] }
  0x28   : > { %v761_v44 = vld [vmem:[%s2254_s15 + $0x80] sm:$0xff]  ;;  %v762_v45 = vld [vmem:[%s2254_s15 + $0x88] sm:$0xff]  ;;  %v747_v46 = vld [vmem:[%s2254_s15 + $0x10] sm:$0xff] }
  0x29   : > { %657 = vmatpush.bf16.msra.mxu0 %v1894_v11  ;;  %1909 = vmatpush.bf16.msra.mxu3 %v1894_v11  ;;  %v748_v47 = vld [vmem:[%s2254_s15 + $0x18] sm:$0xff]  ;;  %v746_v48 = vld [vmem:[%s2254_s15 + $0x8] sm:$0xff]  ;;  %v745_v49 = vld [vmem:[%s2254_s15] sm:$0xff] }
  0x2a   : > { %1907 = vmatpush.bf16.msra.mxu1 %v1894_v11  ;;  %v1877_v50 = vld [vmem:[%s2259_s18 + $0x18] sm:$0xff]  ;;  %v1887_v51 = vld [vmem:[%s2259_s18 + $0x68] sm:$0xff]  ;;  %v1882_v52 = vld [vmem:[%s2259_s18 + $0x40] sm:$0xff] }
  0x2b   : > { %1908 = vmatpush.bf16.msra.mxu2 %v1894_v11  ;;  %v1878_v53 = vld [vmem:[%s2259_s18 + $0x20] sm:$0xff]  ;;  %v1888_v54 = vld [vmem:[%s2259_s18 + $0x70] sm:$0xff]  ;;  %v1883_v55 = vld [vmem:[%s2259_s18 + $0x48] sm:$0xff] }
  0x2c   : > { %859 = vperm.xlu1 %2057, %v772_v12   ;;  %856 = vperm.xlu0 %2056, %v771_v13   ;;  %v1879_v58 = vld [vmem:[%s2259_s18 + $0x28] sm:$0xff]  ;;  %v1889_v59 = vld [vmem:[%s2259_s18 + $0x78] sm:$0xff] }
  0x2d   : > { %658 = vmatpush.bf16.msra.mxu0 %v1893_v14  ;;  %1912 = vmatpush.bf16.msra.mxu3 %v1893_v14 }
  0x2e   : > { %1910 = vmatpush.bf16.msra.mxu1 %v1893_v14 }
  0x2f   : > { %814 = vperm.xlu2 %2058, %v757_v15   ;;  %1911 = vmatpush.bf16.msra.mxu2 %v1893_v14 }
  0x31   : > { %659 = vmatpush.bf16.msra.mxu0 %v1892_v16  ;;  %1915 = vmatpush.bf16.msra.mxu3 %v1892_v16 }
  0x32   : > { %1913 = vmatpush.bf16.msra.mxu1 %v1892_v16 }
  0x33   : > { %1914 = vmatpush.bf16.msra.mxu2 %v1892_v16 }
  0x34   : > { %850 = vperm.xlu1 %2057, %v769_v17   ;;  %817 = vperm.xlu0 %2056, %v758_v18  }
  0x35   : > { %660 = vmatpush.bf16.msra.mxu0 %v1891_v19  ;;  %1918 = vmatpush.bf16.msra.mxu3 %v1891_v19 }
  0x36   : > { %1916 = vmatpush.bf16.msra.mxu1 %v1891_v19 }
  0x37   : > { %853 = vperm.xlu2 %2058, %v770_v20   ;;  %1917 = vmatpush.bf16.msra.mxu2 %v1891_v19 }
  0x39   : > { %661 = vmatpush.bf16.msra.mxu0 %v1890_v21  ;;  %1921 = vmatpush.bf16.msra.mxu3 %v1890_v21 }
  0x3a   : > { %1919 = vmatpush.bf16.msra.mxu1 %v1890_v21 }
  0x3b   : > { %1920 = vmatpush.bf16.msra.mxu2 %v1890_v21 }
  0x3c   : > { %811 = vperm.xlu1 %2057, %v756_v22   ;;  %808 = vperm.xlu0 %2056, %v755_v23  }
  0x3d   : > { %662 = vmatmul.bf16.vlgmr.msra.gmra.mxu0 %v1874_v24  ;;  %712 = vmatmul.bf16.vlgmr.msra.gmra.mxu3 %v1884_v25 }
  0x3e   : > { %692 = vmatmul.bf16.vlgmr.msra.gmra.mxu1 %v1880_v34  ;;  %702 = vmatmul.bf16.vlgmr.msra.gmra.mxu2 %v1882_v52 }
  0x3f   : > { %844 = vperm.xlu2 %2058, %v767_v26  }
  0x44   : > { %847 = vperm.xlu0 %2056, %v768_v27   ;;  %802 = vperm.xlu1 %2057, %v753_v28  }
  0x47   : > { %805 = vperm.xlu2 %2058, %v754_v29  }
  0x4c   : > { %838 = vperm.xlu0 %2056, %v765_v30   ;;  %841 = vperm.xlu1 %2057, %v766_v31  }
  0x4d   : > { %667 = vmatmul.bf16.gmra.mxu0 %v1875_v32  ;;  %717 = vmatmul.bf16.gmra.mxu3 %v1885_v33 }
  0x4e   : > { %697 = vmatmul.bf16.gmra.mxu1 %v1881_v43  ;;  %707 = vmatmul.bf16.gmra.mxu2 %v1883_v55 }
  0x4f   : > { %796 = vperm.xlu2 %2058, %v751_v35  }
  0x54   : > { %832 = vperm.xlu1 %2057, %v763_v36   ;;  %799 = vperm.xlu0 %2056, %v752_v37  }
  0x57   : > { %835 = vperm.xlu2 %2058, %v764_v38  }
  0x5c   : > { %793 = vperm.xlu1 %2057, %v750_v39   ;;  %790 = vperm.xlu0 %2056, %v749_v40  }
  0x5d   : > { %672 = vmatmul.bf16.gmra.mxu0 %v1876_v41  ;;  %722 = vmatmul.bf16.gmra.mxu3 %v1886_v42 }
  0x5f   : > { %826 = vperm.xlu2 %2058, %v761_v44  }
  0x64   : > { %829 = vperm.xlu0 %2056, %v762_v45   ;;  %784 = vperm.xlu1 %2057, %v747_v46  }
  0x67   : > { %787 = vperm.xlu2 %2058, %v748_v47  }
  0x6c   : > { %781 = vperm.xlu1 %2057, %v746_v48   ;;  %778 = vperm.xlu0 %2056, %v745_v49  }
  0x6d   : > { %677 = vmatmul.bf16.gmra.mxu0 %v1877_v50  ;;  %727 = vmatmul.bf16.gmra.mxu3 %v1887_v51 }
  0x79   : > { %v821_v56 = vpop.permute.xlu2 %820 }
  0x7a   : > { %vm887_vm1 = vcmp.eq.s32.totalorder %v821_v56, %v2334_v0 }
  0x7d   : > { %682 = vmatmul.bf16.gmra.mxu0 %v1878_v53  ;;  %732 = vmatmul.bf16.gmra.mxu3 %v1888_v54 }
  0x81   : > { %v824_v57 = vpop.permute.xlu2 %823 }
  0x82   : > { %vm888_vm2 = vcmp.eq.s32.totalorder %v824_v57, %v2334_v0 }
  0x83   : > { %vm1994_vm7 = vmpackc.low %vm888_vm2, %vm887_vm1 }
  0x84   : > { %1995 = vmatpush.lsf.msk.bf16.msk.msrb.mxu1 %vm1994_vm7, %v2160_v4 }
  0x89   : > { %v815_v63 = vpop.permute.xlu2 %814 }
  0x8a   : > { %vm885_vm13 = vcmp.eq.s32.totalorder %v815_v63, %v2334_v0 }
  0x8d   : > { %687 = vmatmul.bf16.gmra.mxu0 %v1879_v58  ;;  %737 = vmatmul.bf16.gmra.mxu3 %v1889_v59 }
  0x8e   : > { %v869_v61 = vpop.permute.xlu0 %868  ;;  %v863_v62 = vpop.permute.xlu1 %862 }
  0x8f   : > { %vm903_vm0 = vcmp.eq.s32.totalorder %v869_v61, %v2334_v0  ;;  %vm901_vm4 = vcmp.eq.s32.totalorder %v863_v62, %v2334_v0 }
  0x91   : > { %v854_v3 = vpop.permute.xlu2 %853 }
  0x92   : > { %vm898_vm12 = vcmp.eq.s32.totalorder %v854_v3, %v2334_v0 }
  0x96   : > { %v872_v1 = vpop.permute.xlu0 %871  ;;  %v866_v2 = vpop.permute.xlu1 %865 }
  0x97   : > { %vm904_vm3 = vcmp.eq.s32.totalorder %v872_v1, %v2334_v0  ;;  %vm902_vm5 = vcmp.eq.s32.totalorder %v866_v2, %v2334_v0 }
  0x98   : > { %vm2010_vm6 = vmpackc.low %vm904_vm3, %vm903_vm0 }
  0x99   : > { %2011 = vmatpush.lsf.msk.bf16.msk.msrb.mxu2 %vm2010_vm6, %v2160_v4  ;;  %vm2012_vm8 = vmpackc.low %vm902_vm5, %vm901_vm4  ;;  %v845_v7 = vpop.permute.xlu2 %844 }
  0x9a   : > { %vm895_vm5 = vcmp.eq.s32.totalorder %v845_v7, %v2334_v0 }
  0x9d   : > { %2013 = vmatpush.lsf.msk.bf16.msk.msrb.mxu2 %vm2012_vm8, %v2160_v4 }
  0x9e   : > { %v860_v5 = vpop.permute.xlu1 %859  ;;  %v857_v6 = vpop.permute.xlu0 %856 }
  0x9f   : > { %vm900_vm9 = vcmp.eq.s32.totalorder %v860_v5, %v2334_v0  ;;  %vm899_vm10 = vcmp.eq.s32.totalorder %v857_v6, %v2334_v0 }
  0xa0   : > { %vm2014_vm11 = vmpackc.low %vm900_vm9, %vm899_vm10 }
  0xa1   : > { %2015 = vmatpush.lsf.msk.bf16.msk.msrb.mxu2 %vm2014_vm11, %v2160_v4  ;;  %v806_v10 = vpop.permute.xlu2 %805 }
  0xa2   : > { %vm882_vm6 = vcmp.eq.s32.totalorder %v806_v10, %v2334_v0 }
  0xa6   : > { %v851_v8 = vpop.permute.xlu1 %850  ;;  %v818_v9 = vpop.permute.xlu0 %817 }
  0xa7   : > { %vm897_vm14 = vcmp.eq.s32.totalorder %v851_v8, %v2334_v0  ;;  %vm886_vm15 = vcmp.eq.s32.totalorder %v818_v9, %v2334_v0 }
  0xa8   : > { %vm2016_vm0 = vmpackc.low %vm898_vm12, %vm897_vm14 }
  0xa9   : > { %vm1996_vm1 = vmpackc.low %vm886_vm15, %vm885_vm13  ;;  %2017 = vmatpush.lsf.msk.bf16.msk.msrb.mxu2 %vm2016_vm0, %v2160_v4  ;;  %v797_v15 = vpop.permute.xlu2 %796 }
  0xaa   : > { %1997 = vmatpush.lsf.msk.bf16.msk.msrb.mxu1 %vm1996_vm1, %v2160_v4  ;;  %vm879_vm15 = vcmp.eq.s32.totalorder %v797_v15, %v2334_v0  ;;  %v985_v15 = vld [vmem:[#allocation2] sm:$0xff] }
  0xae   : > { %v812_v11 = vpop.permute.xlu1 %811  ;;  %v809_v12 = vpop.permute.xlu0 %808 }
  0xaf   : > { %vm884_vm2 = vcmp.eq.s32.totalorder %v812_v11, %v2334_v0  ;;  %vm883_vm3 = vcmp.eq.s32.totalorder %v809_v12, %v2334_v0 }
  0xb0   : > { %vm1998_vm4 = vmpackc.low %vm884_vm2, %vm883_vm3 }
  0xb1   : > { %1999 = vmatpush.lsf.msk.bf16.msk.msrb.mxu1 %vm1998_vm4, %v2160_v4  ;;  %v836_v20 = vpop.permute.xlu2 %835 }
  0xb2   : > { %vm892_vm14 = vcmp.eq.s32.totalorder %v836_v20, %v2334_v0  ;;  %v986_v20 = vld [vmem:[#allocation2 + $0x8] sm:$0xff] }
  0xb6   : > { %v848_v13 = vpop.permute.xlu0 %847  ;;  %v803_v14 = vpop.permute.xlu1 %802 }
  0xb7   : > { %vm896_vm7 = vcmp.eq.s32.totalorder %v848_v13, %v2334_v0  ;;  %vm881_vm8 = vcmp.eq.s32.totalorder %v803_v14, %v2334_v0 }
  0xb8   : > { %vm2018_vm9 = vmpackc.low %vm896_vm7, %vm895_vm5 }
  0xb9   : > { %vm2000_vm10 = vmpackc.low %vm882_vm6, %vm881_vm8  ;;  %2019 = vmatpush.lsf.msk.bf16.msk.msrb.mxu2 %vm2018_vm9, %v2160_v4  ;;  %v827_v28 = vpop.permute.xlu2 %826 }
  0xba   : > { %v2362_v16 = vpop.f32.mrf.mxu0  ;;  %2001 = vmatpush.lsf.msk.bf16.msk.msrb.mxu1 %vm2000_vm10, %v2160_v4  ;;  %vm889_vm7 = vcmp.eq.s32.totalorder %v827_v28, %v2334_v0 }
  0xbb   : > { %v693_v29 = vpop.f32.mrf.mxu1 }
  0xbe   : > { %v839_v17 = vpop.permute.xlu0 %838  ;;  %v842_v18 = vpop.permute.xlu1 %841 }
  0xbf   : > { %vm893_vm11 = vcmp.eq.s32.totalorder %v839_v17, %v2334_v0  ;;  %vm894_vm12 = vcmp.eq.s32.totalorder %v842_v18, %v2334_v0 }
  0xc0   : > { %vm2020_vm13 = vmpackc.low %vm894_vm12, %vm893_vm11  ;;  %v2367_v19 = vpop.f32.mrf.mxu3 }
  0xc1   : > { %2021 = vmatpush.lsf.msk.bf16.msk.msrb.mxu2 %vm2020_vm13, %v2160_v4  ;;  %v788_v36 = vpop.permute.xlu2 %787  ;;  %v703_v60 = vpop.f32.mrf.mxu2 }
  0xc2   : > { %v2370_v21 = vpop.f32.mrf.mxu0  ;;  %vm876_vm10 = vcmp.eq.s32.totalorder %v788_v36, %v2334_v0 }
  0xc3   : > { %v993_v22 = vpack.c.bf16 %v2370_v21, %v2362_v16  ;;  %v695_v35 = vpop.f32.mrf.mxu1 }
  0xc4   : > { %v999_v49 = vpack.c.bf16 %v695_v35, %v693_v29  ;;  %v988_v29 = vld [vmem:[#allocation2 + $0x18] sm:$0xff] }
  0xc6   : > { %v833_v23 = vpop.permute.xlu1 %832  ;;  %v800_v24 = vpop.permute.xlu0 %799 }
  0xc7   : > { %vm891_vm0 = vcmp.eq.s32.totalorder %v833_v23, %v2334_v0  ;;  %vm880_vm1 = vcmp.eq.s32.totalorder %v800_v24, %v2334_v0 }
  0xc8   : > { %vm2022_vm2 = vmpackc.low %vm892_vm14, %vm891_vm0  ;;  %v2378_v25 = vpop.f32.mrf.mxu3 }
  0xc9   : > { %vm2002_vm3 = vmpackc.low %vm880_vm1, %vm879_vm15  ;;  %v1003_v26 = vpack.c.bf16 %v2378_v25, %v2367_v19  ;;  %2023 = vmatpush.lsf.msk.bf16.msk.msrb.mxu2 %vm2022_vm2, %v2160_v4  ;;  %v705_v3 = vpop.f32.mrf.mxu2  ;;  %v987_v25 = vld [vmem:[#allocation2 + $0x10] sm:$0xff] }
  0xca   : > { %v2383_v27 = vpop.f32.mrf.mxu0  ;;  %2003 = vmatpush.lsf.msk.bf16.msk.msrb.mxu1 %vm2002_vm3, %v2160_v4  ;;  %v1001_v12 = vpack.c.bf16 %v705_v3, %v703_v60 }
  0xcb   : > { %v698_v42 = vpop.f32.mrf.mxu1 }
  0xce   : > { %v794_v30 = vpop.permute.xlu1 %793  ;;  %v791_v31 = vpop.permute.xlu0 %790 }
  0xcf   : > { %vm878_vm4 = vcmp.eq.s32.totalorder %v794_v30, %v2334_v0  ;;  %vm877_vm5 = vcmp.eq.s32.totalorder %v791_v31, %v2334_v0 }
  0xd0   : > { %vm2004_vm6 = vmpackc.low %vm878_vm4, %vm877_vm5  ;;  %v2388_v32 = vpop.f32.mrf.mxu3 }
  0xd1   : > { %2005 = vmatpush.lsf.msk.bf16.msk.msrb.mxu1 %vm2004_vm6, %v2160_v4  ;;  %v708_v8 = vpop.f32.mrf.mxu2 }
  0xd2   : > { %v2391_v33 = vpop.f32.mrf.mxu0 }
  0xd3   : > { %v994_v34 = vpack.c.bf16 %v2391_v33, %v2383_v27  ;;  %v700_v47 = vpop.f32.mrf.mxu1 }
  0xd4   : > { %v1000_v48 = vpack.c.bf16 %v700_v47, %v698_v42 }
  0xd6   : > { %v830_v37 = vpop.permute.xlu0 %829  ;;  %v785_v38 = vpop.permute.xlu1 %784 }
  0xd7   : > { %vm890_vm8 = vcmp.eq.s32.totalorder %v830_v37, %v2334_v0  ;;  %vm875_vm9 = vcmp.eq.s32.totalorder %v785_v38, %v2334_v0 }
  0xd8   : > { %vm2024_vm11 = vmpackc.low %vm890_vm8, %vm889_vm7  ;;  %v720_v39 = vpop.f32.mrf.mxu3 }
  0xd9   : > { %vm2006_vm12 = vmpackc.low %vm876_vm10, %vm875_vm9  ;;  %v1004_v40 = vpack.c.bf16 %v720_v39, %v2388_v32  ;;  %2025 = vmatpush.lsf.msk.bf16.msk.msrb.mxu2 %vm2024_vm11, %v2160_v4  ;;  %v710_v10 = vpop.f32.mrf.mxu2  ;;  %v990_v39 = vld [vmem:[#allocation2 + $0x28] sm:$0xff] }
  0xda   : > { %v673_v41 = vpop.f32.mrf.mxu0  ;;  %2007 = vmatpush.lsf.msk.bf16.msk.msrb.mxu1 %vm2006_vm12, %v2160_v4  ;;  %v1002_v11 = vpack.c.bf16 %v710_v10, %v708_v8 }
  0xdb   : > { %1985 = vllmr.8.mxu2 }
  0xde   : > { %v782_v43 = vpop.permute.xlu1 %781  ;;  %v779_v44 = vpop.permute.xlu0 %778 }
  0xdf   : > { %vm874_vm13 = vcmp.eq.s32.totalorder %v782_v43, %v2334_v0  ;;  %vm873_vm14 = vcmp.eq.s32.totalorder %v779_v44, %v2334_v0  ;;  %v991_v44 = vld [vmem:[#allocation2 + $0x30] sm:$0xff] }
  0xe0   : > { %vm2008_vm15 = vmpackc.low %vm874_vm13, %vm873_vm14  ;;  %v723_v45 = vpop.f32.mrf.mxu3 }
  0xe1   : > { %2009 = vmatpush.lsf.msk.bf16.msk.msrb.mxu1 %vm2008_vm15, %v2160_v4 }
  0xe2   : > { %v675_v46 = vpop.f32.mrf.mxu0 }
  0xe3   : > { %1965 = vllmr.8.mxu1  ;;  %v995_v6 = vpack.c.bf16 %v675_v46, %v673_v41 }
  0xe5   : > { %1041 = vmatpush.bf16.msra.mxu1 %v1000_v48 }
  0xe8   : > { %v725_v50 = vpop.f32.mrf.mxu3 }
  0xe9   : > { %1042 = vmatpush.bf16.msra.mxu1 %v999_v49  ;;  %v1005_v9 = vpack.c.bf16 %v725_v50, %v723_v45  ;;  %v992_v49 = vld [vmem:[#allocation2 + $0x38] sm:$0xff] }
  0xea   : > { %v678_v51 = vpop.f32.mrf.mxu0 }
  0xf0   : > { %v728_v52 = vpop.f32.mrf.mxu3 }
  0xf2   : > { %v680_v53 = vpop.f32.mrf.mxu0 }
  0xf3   : > { %v996_v4 = vpack.c.bf16 %v680_v53, %v678_v51 }
  0xf8   : > { %v730_v54 = vpop.f32.mrf.mxu3 }
  0xf9   : > { %v1006_v7 = vpack.c.bf16 %v730_v54, %v728_v52 }
  0xfa   : > { %v683_v55 = vpop.f32.mrf.mxu0 }
 0x100   : > { %v733_v56 = vpop.f32.mrf.mxu3 }
 0x102   : > { %v685_v57 = vpop.f32.mrf.mxu0 }
 0x103   : > { %v997_v0 = vpack.c.bf16 %v685_v57, %v683_v55 }
 0x108   : > { %v735_v58 = vpop.f32.mrf.mxu3 }
 0x109   : > { %v1007_v5 = vpack.c.bf16 %v735_v58, %v733_v56 }
 0x10a   : > { %v688_v59 = vpop.f32.mrf.mxu0 }
 0x110   : > { %v738_v61 = vpop.f32.mrf.mxu3 }
 0x112   : > { %v690_v62 = vpop.f32.mrf.mxu0 }
 0x113   : > { %v998_v63 = vpack.c.bf16 %v690_v62, %v688_v59 }
 0x115   : > { %1043 = vmatpush.bf16.msra.mxu1 %v998_v63 }
 0x118   : > { %v740_v1 = vpop.f32.mrf.mxu3 }
 0x119   : > { %v1008_v2 = vpack.c.bf16 %v740_v1, %v738_v61  ;;  %1044 = vmatpush.bf16.msra.mxu1 %v997_v0 }
 0x11b   : > { %1070 = vmatpush.bf16.msra.mxu2 %v1008_v2 }
 0x11d   : > { %1045 = vmatpush.bf16.msra.mxu1 %v996_v4 }
 0x11f   : > { %1071 = vmatpush.bf16.msra.mxu2 %v1007_v5 }
 0x121   : > { %1046 = vmatpush.bf16.msra.mxu1 %v995_v6 }
 0x123   : > { %1072 = vmatpush.bf16.msra.mxu2 %v1006_v7 }
 0x125   : > { %1047 = vmatpush.bf16.msra.mxu1 %v994_v34  ;;  %v989_v34 = vld [vmem:[#allocation2 + $0x20] sm:$0xff] }
 0x127   : > { %1073 = vmatpush.bf16.msra.mxu2 %v1005_v9 }
 0x129   : > { %1048 = vmatpush.bf16.msra.mxu1 %v993_v22 }
 0x12b   : > { %1074 = vmatpush.bf16.msra.mxu2 %v1004_v40 }
 0x12c   : > { %1966 = vmatmul.lmr.bf16.vlgmr.msra.gmra.8.mxu1 }
 0x12f   : > { %1075 = vmatpush.bf16.msra.mxu2 %v1003_v26 }
 0x133   : > { %1076 = vmatpush.bf16.msra.mxu2 %v1002_v11 }
 0x134   : > { %1967 = vmatmul.lmr.bf16.gmra.8.mxu1 }
 0x137   : > { %1077 = vmatpush.bf16.msra.mxu2 %v1001_v12 }
 0x13a   : > { %1986 = vmatmul.lmr.bf16.vlgmr.msra.gmra.8.mxu2 }
 0x13c   : > { %1968 = vmatmul.lmr.bf16.gmra.8.mxu1 }
 0x142   : > { %1987 = vmatmul.lmr.bf16.gmra.8.mxu2 }
 0x144   : > { %1969 = vmatmul.lmr.bf16.gmra.8.mxu1 }
 0x14a   : > { %1988 = vmatmul.lmr.bf16.gmra.8.mxu2 }
 0x14c   : > { %1970 = vmatmul.lmr.bf16.gmra.8.mxu1 }
 0x152   : > { %1989 = vmatmul.lmr.bf16.gmra.8.mxu2 }
 0x154   : > { %1971 = vmatmul.lmr.bf16.gmra.8.mxu1 }
 0x15a   : > { %1990 = vmatmul.lmr.bf16.gmra.8.mxu2 }
 0x15c   : > { %1972 = vmatmul.lmr.bf16.gmra.8.mxu1 }
 0x162   : > { %1991 = vmatmul.lmr.bf16.gmra.8.mxu2 }
 0x164   : > { %1973 = vmatmul.lmr.bf16.gmra.8.mxu1 }
 0x16a   : > { %1992 = vmatmul.lmr.bf16.gmra.8.mxu2 }
 0x172   : > { %1993 = vmatmul.lmr.bf16.gmra.8.mxu2 }
 0x1a9   : > { %v1050_v13 = vpop.f32.mrf.mxu1 }
 0x1b1   : > { %v1052_v14 = vpop.f32.mrf.mxu1 }
 0x1b9   : > { %v1055_v19 = vpop.f32.mrf.mxu1 }
 0x1bd   : > { %v1079_v16 = vpop.f32.mrf.mxu2 }
 0x1be   : > { %v1080_v17 = vadd.f32 %v1079_v16, %v1050_v13 }
 0x1c0   : > { %v1099_v18 = vadd.f32 %v1080_v17, %v985_v15 }
 0x1c1   : > { %v1057_v24 = vpop.f32.mrf.mxu1 }
 0x1c2   : > { %1107 = vst [vmem:[#allocation2] sm:$0xff] %v1099_v18 }
 0x1c5   : > { %v1081_v21 = vpop.f32.mrf.mxu2 }
 0x1c6   : > { %v1082_v22 = vadd.f32 %v1081_v21, %v1052_v14 }
 0x1c8   : > { %v1100_v23 = vadd.f32 %v1082_v22, %v986_v20 }
 0x1c9   : > { %v1060_v31 = vpop.f32.mrf.mxu1 }
 0x1ca   : > { %1108 = vst [vmem:[#allocation2 + $0x8] sm:$0xff] %v1100_v23 }
 0x1cd   : > { %v1084_v26 = vpop.f32.mrf.mxu2 }
 0x1ce   : > { %v1085_v27 = vadd.f32 %v1084_v26, %v1055_v19 }
 0x1d0   : > { %v1101_v28 = vadd.f32 %v1085_v27, %v987_v25 }
 0x1d1   : > { %v1062_v37 = vpop.f32.mrf.mxu1 }
 0x1d2   : > { %1109 = vst [vmem:[#allocation2 + $0x10] sm:$0xff] %v1101_v28 }
 0x1d5   : > { %v1086_v30 = vpop.f32.mrf.mxu2 }
 0x1d6   : > { %v1087_v32 = vadd.f32 %v1086_v30, %v1057_v24 }
 0x1d8   : > { %v1102_v33 = vadd.f32 %v1087_v32, %v988_v29 }
 0x1d9   : > { %v1065_v43 = vpop.f32.mrf.mxu1 }
 0x1da   : > { %1110 = vst [vmem:[#allocation2 + $0x18] sm:$0xff] %v1102_v33 }
 0x1dd   : > { %v1089_v35 = vpop.f32.mrf.mxu2 }
 0x1de   : > { %v1090_v36 = vadd.f32 %v1089_v35, %v1060_v31 }
 0x1e0   : > { %v1103_v38 = vadd.f32 %v1090_v36, %v989_v34 }
 0x1e1   : > { %v1067_v48 = vpop.f32.mrf.mxu1 }
 0x1e2   : > { %1111 = vst [vmem:[#allocation2 + $0x20] sm:$0xff] %v1103_v38 }
 0x1e5   : > { %v1091_v40 = vpop.f32.mrf.mxu2 }
 0x1e6   : > { %v1092_v41 = vadd.f32 %v1091_v40, %v1062_v37 }
 0x1e8   : > { %v1104_v42 = vadd.f32 %v1092_v41, %v990_v39 }
 0x1ea   : > { %1112 = vst [vmem:[#allocation2 + $0x28] sm:$0xff] %v1104_v42 }
 0x1ed   : > { %v1094_v45 = vpop.f32.mrf.mxu2 }
 0x1ee   : > { %v1095_v46 = vadd.f32 %v1094_v45, %v1065_v43 }
 0x1f0   : > { %v1105_v47 = vadd.f32 %v1095_v46, %v991_v44 }
 0x1f2   : > { %1113 = vst [vmem:[#allocation2 + $0x30] sm:$0xff] %v1105_v47 }
 0x1f5   : > { %v1096_v50 = vpop.f32.mrf.mxu2 }
 0x1f6   : > { %v1097_v51 = vadd.f32 %v1096_v50, %v1067_v48  ;;  %1118 = sbr.rel (%p1867_p5) target bundleno = 873 (0x369), region = 76 }
 0x1f8   : > { %v1106_v52 = vadd.f32 %v1097_v51, %v992_v49 }
 0x1fa   : > { %1114 = vst [vmem:[#allocation2 + $0x38] sm:$0xff] %v1106_v52 }
 0x1fb   : > { %v2415_v53 = vld [vmem:[#allocation2 + $0x10] sm:$0xff]  ;;  %v2417_v54 = vld [vmem:[#allocation2] sm:$0xff]  ;;  %v2419_v55 = vld [vmem:[#allocation2 + $0x18] sm:$0xff] }
 0x1fc   : > { %v1145_v56 = vmax.f32 %v2415_v53, 1e-30  ;;  %v1143_v57 = vmax.f32 %v2417_v54, 1e-30  ;;  %v1146_v58 = vmax.f32 %v2419_v55, 1e-30 }
 0x1fd   : > { %v2424_v60 = vld [vmem:[#allocation2 + $0x8] sm:$0xff]  ;;  %v2428_v0 = vld [vmem:[#allocation2 + $0x30] sm:$0xff]  ;;  %vm1137_vm2 = vcmp.gt.f32.partialorder %v2415_v53, 0.0  ;;  %vm1135_vm4 = vcmp.gt.f32.partialorder %v2417_v54, 0.0  ;;  %vm1138_vm12 = vcmp.gt.f32.partialorder %v2419_v55, 0.0  ;;  %v2477_v28 = vld [vmem:[#allocation2 + $0x20] sm:$0xff] }
 0x1fe   : > { %2066 = vrcp.f32 %v1145_v56  ;;  %v1190_v59 = vand.u32 2147483647, %v1145_v56  ;;  %v1192_v62 = vand.u32 2147483648, %v1145_v56  ;;  %v1160_v63 = vand.u32 2147483647, %v1143_v57  ;;  %v1354_v35 = vld [vmem:[%s2842_s5 + $0x78] sm:$0xff] }
 0x1ff   : > { %2068 = vrcp.f32 %v1143_v57  ;;  %v1162_v1 = vand.u32 2147483648, %v1143_v57  ;;  %v2431_v2 = vmax.f32 %v2424_v60, 1e-30  ;;  %vm1186_vm0 = vweird.f32 %v1145_v56  ;;  %v1353_v36 = vld [vmem:[%s2842_s5 + $0x70] sm:$0xff]  ;;  %1922 = vmatpush.msra.mxu2 %v1354_v35  ;;  %1355 = vmatpush.msra.mxu0 %v1354_v35  ;;  %v1352_v45 = vld [vmem:[%s2842_s5 + $0x68] sm:$0xff] }
 0x200   : > { %2070 = vrcp.f32 %v1146_v58  ;;  %vm1156_vm1 = vweird.f32 %v1143_v57  ;;  %vm2437_vm3 = vcmp.eq.f32.partialorder %v1190_v59, 8.507059e+37  ;;  %v1193_v6 = vor.u32 1.1754944e-38, %v1192_v62  ;;  %1923 = vmatpush.msra.mxu3 %v1354_v35  ;;  %v2556_v5 = vld [vmem:[#allocation2 + $0x28] sm:$0xff]  ;;  %v1345_v38 = vld [vmem:[%s2842_s5 + $0x30] sm:$0xff]  ;;  %v1342_v62 = vld [vmem:[%s2842_s5 + $0x18] sm:$0xff] }
 0x201   : > { %v2426_v61 = vld [vmem:[#allocation2 + $0x38] sm:$0xff]  ;;  %2072 = vrcp.f32 %v2431_v2  ;;  %v2443_v7 = vmax.f32 %v2428_v0, 1e-30  ;;  %vm1201_vm5 = vweird.f32 %v1146_v58  ;;  %v1205_v10 = vand.u32 2147483647, %v1146_v58  ;;  %1924 = vmatpush.msra.mxu2 %v1353_v36  ;;  %1356 = vmatpush.msra.mxu0 %v1353_v36 }
 0x202   : > { %v2434_v3 = vmax.f32 %v2426_v61, 1e-30  ;;  %vm2452_vm6 = vcmp.eq.f32.partialorder %v1160_v63, 8.507059e+37  ;;  %v1163_v14 = vor.u32 1.1754944e-38, %v1162_v1  ;;  %v1207_v15 = vand.u32 2147483648, %v1146_v58  ;;  %1925 = vmatpush.msra.mxu3 %v1353_v36 }
 0x203   : > { %v1175_v18 = vand.u32 2147483647, %v2431_v2  ;;  %v1177_v20 = vand.u32 2147483648, %v2431_v2  ;;  %vm2462_vm10 = vcmp.eq.f32.partialorder %v1205_v10, 8.507059e+37  ;;  %vm1171_vm13 = vweird.f32 %v2431_v2  ;;  %1926 = vmatpush.msra.mxu2 %v1352_v45  ;;  %1357 = vmatpush.msra.mxu0 %v1352_v45 }
 0x204   : > { %v2067_v4 = vpop.eup %2066  ;;  %2074 = vrcp.f32 %v2434_v3  ;;  %v1208_v27 = vor.u32 1.1754944e-38, %v1207_v15  ;;  %vm1261_vm14 = vweird.f32 %v2434_v3  ;;  %v1265_v41 = vand.u32 2147483647, %v2434_v3  ;;  %1927 = vmatpush.msra.mxu3 %v1352_v45  ;;  %v1349_v15 = vld [vmem:[%s2842_s5 + $0x50] sm:$0xff] }
 0x205   : > { %v2445_v8 = vpop.eup %2068  ;;  %v1182_v9 = vmul.f32 %v2067_v4, %v1145_v56  ;;  %vm1187_vm7 = vweird.f32 %v2067_v4  ;;  %2076 = vrcp.f32 %v2443_v7  ;;  %v1178_v39 = vor.u32 1.1754944e-38, %v1177_v20 }
 0x206   : > { %v2449_v11 = vpop.eup %2070  ;;  %v1152_v12 = vmul.f32 %v2445_v8, %v1143_v57  ;;  %vm1157_vm8 = vweird.f32 %v2445_v8  ;;  %vm2469_vm11 = vmor %vm1186_vm0, %vm1187_vm7  ;;  %vm1136_vm0 = vcmp.gt.f32.partialorder %v2424_v60, 0.0  ;;  %vm2492_vm7 = vcmp.eq.f32.partialorder %v1175_v18, 8.507059e+37 }
 0x207   : > { %v1183_v16 = vsub.f32 1.0, %v1182_v9  ;;  %v1197_v17 = vmul.f32 %v2449_v11, %v1146_v58  ;;  %vm1202_vm9 = vweird.f32 %v2449_v11  ;;  %v2466_v24 = vpop.eup %2072  ;;  %vm2484_vm15 = vmor %vm1156_vm1, %vm1157_vm8  ;;  %v2528_v50 = vmax.f32 %v2477_v28, 1e-30  ;;  %v1351_v58 = vld [vmem:[%s2842_s5 + $0x60] sm:$0xff] }
 0x208   : > { %v1153_v19 = vsub.f32 1.0, %v1152_v12  ;;  %v1167_v33 = vmul.f32 %v2466_v24, %v2431_v2  ;;  %vm2506_vm1 = vmor %vm1201_vm5, %vm1202_vm9  ;;  %vm1172_vm8 = vweird.f32 %v2466_v24  ;;  %v1267_v1 = vand.u32 2147483648, %v2434_v3  ;;  %v1350_v2 = vld [vmem:[%s2842_s5 + $0x58] sm:$0xff]  ;;  %1928 = vmatpush.msra.mxu2 %v1351_v58  ;;  %1358 = vmatpush.msra.mxu0 %v1351_v58 }
 0x209   : > { %v1184_v21 = vmul.f32 %v2067_v4, %v1183_v16  ;;  %v1198_v22 = vsub.f32 1.0, %v1197_v17  ;;  %2078 = vrcp.f32 %v2528_v50  ;;  %v1250_v10 = vand.u32 2147483647, %v2443_v7  ;;  %1929 = vmatpush.msra.mxu3 %v1351_v58  ;;  %v1322_v17 = vld [vmem:[%s2839_s2 + $0x18] sm:$0xff] }
 0x20a   : > { %v1154_v26 = vmul.f32 %v2445_v8, %v1153_v19  ;;  %v2479_v29 = vpop.eup %2074  ;;  %v1168_v44 = vsub.f32 1.0, %v1167_v33  ;;  %v1252_v13 = vand.u32 2147483648, %v2443_v7  ;;  %1930 = vmatpush.msra.mxu2 %v1350_v2  ;;  %1359 = vmatpush.msra.mxu0 %v1350_v2  ;;  %v1268_v23 = vor.u32 1.1754944e-38, %v1267_v1  ;;  %v1346_v33 = vld [vmem:[%s2842_s5 + $0x38] sm:$0xff] }
 0x20b   : > { %v1185_v30 = vadd.f32 %v2067_v4, %v1184_v21  ;;  %v1199_v32 = vmul.f32 %v2449_v11, %v1198_v22  ;;  %v1257_v40 = vmul.f32 %v2479_v29, %v2434_v3  ;;  %v2520_v46 = vpop.eup %2076  ;;  %v1348_v21 = vld [vmem:[%s2842_s5 + $0x48] sm:$0xff]  ;;  %1931 = vmatpush.msra.mxu3 %v1350_v2  ;;  %v1220_v3 = vand.u32 2147483647, %v2528_v50  ;;  %v1610_v58 = vld [vmem:[%s2843_s6 + $0x18] sm:$0xff] }
 0x20c   : > { %v1155_v37 = vadd.f32 %v2445_v8, %v1154_v26  ;;  %v1169_v57 = vmul.f32 %v2466_v24, %v1168_v44  ;;  %vm1247_vm5 = vweird.f32 %v2520_v46  ;;  %1932 = vmatpush.msra.mxu2 %v1349_v15  ;;  %1360 = vmatpush.msra.mxu0 %v1349_v15 }
 0x20d   : > { %v1189_v42 = vsel %vm2469_vm11, %v2067_v4, %v1185_v30  ;;  %v1200_v43 = vadd.f32 %v2449_v11, %v1199_v32  ;;  %v1258_v49 = vsub.f32 1.0, %v1257_v40  ;;  %v1242_v4 = vmul.f32 %v2520_v46, %v2443_v7  ;;  %v1347_v30 = vld [vmem:[%s2842_s5 + $0x40] sm:$0xff]  ;;  %1933 = vmatpush.msra.mxu3 %v1349_v15 }
 0x20e   : > { %v1194_v47 = vsel %vm2437_vm3, %v1193_v6, %v1189_v42  ;;  %v1159_v48 = vsel %vm2484_vm15, %v2445_v8, %v1155_v37  ;;  %v1170_v6 = vadd.f32 %v2466_v24, %v1169_v57  ;;  %vm1262_vm3 = vweird.f32 %v2479_v29  ;;  %1934 = vmatpush.msra.mxu2 %v1348_v21  ;;  %1361 = vmatpush.msra.mxu0 %v1348_v21 }
 0x20f   : > { %v1273_v51 = vsel %vm1137_vm2, %v1194_v47, 0.0  ;;  %v1164_v52 = vsel %vm2452_vm6, %v1163_v14, %v1159_v48  ;;  %v1204_v56 = vsel %vm2506_vm1, %v2449_v11, %v1200_v43  ;;  %vm2548_vm2 = vmor %vm1171_vm13, %vm1172_vm8  ;;  %v1259_v63 = vmul.f32 %v2479_v29, %v1258_v49  ;;  %1935 = vmatpush.msra.mxu3 %v1348_v21  ;;  %v1344_v47 = vld [vmem:[%s2842_s5 + $0x28] sm:$0xff] }
 0x210   : > { %1291 = vrot.lane.b32.xlu1 %v1273_v51, %s2161_s30  ;;  %v1271_v59 = vsel %vm1135_vm4, %v1164_v52, 0.0  ;;  %vm1246_vm4 = vweird.f32 %v2443_v7  ;;  %v1209_v8 = vsel %vm2462_vm10, %v1208_v27, %v1204_v56  ;;  %v1243_v9 = vsub.f32 1.0, %v1242_v4  ;;  %vm2587_vm6 = vmor %vm1261_vm14, %vm1262_vm3  ;;  %v2079_v7 = vpop.eup %2078  ;;  %1936 = vmatpush.msra.mxu2 %v1347_v30  ;;  %v1343_v51 = vld [vmem:[%s2842_s5 + $0x20] sm:$0xff]  ;;  %v1341_v4 = vld [vmem:[%s2842_s5 + $0x10] sm:$0xff] }
 0x211   : > { %1287 = vrot.lane.b32.xlu0 %v1271_v59, %s2161_s30  ;;  %v1174_v11 = vsel %vm2548_vm2, %v2466_v24, %v1170_v6  ;;  %v1260_v12 = vadd.f32 %v2479_v29, %v1259_v63  ;;  %v2576_v14 = vmax.f32 %v2556_v5, 1e-30  ;;  %v1274_v19 = vsel %vm1138_vm12, %v1209_v8, 0.0  ;;  %vm2598_vm9 = vmor %vm1246_vm4, %vm1247_vm5  ;;  %1362 = vmatpush.msra.mxu0 %v1347_v30  ;;  %v2062_v6 = vld [vmem:[%s2844_s7] ss:$0 sm:$0xff]  ;;  %v1321_v8 = vld [vmem:[%s2839_s2 + $0x10] sm:$0xff] }
 0x212   : > { %v1179_v16 = vsel %vm2492_vm7, %v1178_v39, %v1174_v11  ;;  %v1244_v18 = vmul.f32 %v2520_v46, %v1243_v9  ;;  %vm1266_vm10 = vcmp.eq.f32.partialorder %v1265_v41, 8.507059e+37  ;;  %vm2614_vm11 = vcmp.eq.f32.partialorder %v1250_v10, 8.507059e+37  ;;  %1938 = vmatpush.msra.mxu2 %v1346_v33  ;;  %1937 = vmatpush.msra.mxu3 %v1347_v30  ;;  %v1340_v10 = vld [vmem:[%s2842_s5 + $0x8] sm:$0xff]  ;;  %v1319_v11 = vld [vmem:[%s2839_s2] sm:$0xff]  ;;  %v1622_v30 = vld [vmem:[%s2843_s6 + $0x78] sm:$0xff] }
 0x213   : > { %2080 = vrcp.f32 %v2576_v14  ;;  %v1272_v22 = vsel %vm1136_vm0, %v1179_v16, 0.0  ;;  %v1264_v25 = vsel %vm2587_vm6, %v2479_v29, %v1260_v12  ;;  %v1253_v27 = vor.u32 1.1754944e-38, %v1252_v13  ;;  %1363 = vmatpush.msra.mxu0 %v1346_v33  ;;  %v1339_v12 = vld [vmem:[%s2842_s5] sm:$0xff]  ;;  %v1324_v16 = vld [vmem:[%s2839_s2 + $0x28] sm:$0xff]  ;;  %1623 = vmatpush.msra.mxu1 %v1622_v30 }
 0x214   : > { %v1245_v24 = vadd.f32 %v2520_v46, %v1244_v18  ;;  %v1212_v29 = vmul.f32 %v2079_v7, %v2528_v50  ;;  %v1222_v32 = vand.u32 2147483648, %v2528_v50  ;;  %vm1142_vm12 = vcmp.gt.f32.partialorder %v2426_v61, 0.0  ;;  %1940 = vmatpush.msra.mxu2 %v1345_v38  ;;  %1939 = vmatpush.msra.mxu3 %v1346_v33  ;;  %v1617_v33 = vld [vmem:[%s2843_s6 + $0x50] sm:$0xff] }
 0x215   : > { %v1269_v34 = vsel %vm1266_vm10, %v1268_v23, %v1264_v25  ;;  %vm1216_vm13 = vweird.f32 %v2528_v50  ;;  %vm1217_vm14 = vweird.f32 %v2079_v7  ;;  %vm1141_vm15 = vcmp.gt.f32.partialorder %v2428_v0, 0.0  ;;  %1364 = vmatpush.msra.mxu0 %v1345_v38  ;;  %v1323_v23 = vld [vmem:[%s2839_s2 + $0x20] sm:$0xff]  ;;  %v1326_v25 = vld [vmem:[%s2839_s2 + $0x38] sm:$0xff] }
 0x216   : > { %v1249_v31 = vsel %vm2598_vm9, %v2520_v46, %v1245_v24  ;;  %v1213_v35 = vsub.f32 1.0, %v1212_v29  ;;  %vm2640_vm0 = vcmp.eq.f32.partialorder %v1220_v3, 8.507059e+37  ;;  %v1223_v41 = vor.u32 1.1754944e-38, %v1222_v32  ;;  %vm2650_vm7 = vmor %vm1216_vm13, %vm1217_vm14  ;;  %1942 = vmatpush.msra.mxu2 %v1344_v47  ;;  %1941 = vmatpush.msra.mxu3 %v1345_v38  ;;  %v1620_v29 = vld [vmem:[%s2843_s6 + $0x68] sm:$0xff]  ;;  %v1619_v3 = vld [vmem:[%s2843_s6 + $0x60] sm:$0xff] }
 0x217   : > { %v1254_v37 = vsel %vm2614_vm11, %v1253_v27, %v1249_v31  ;;  %v1278_v43 = vsel %vm1142_vm12, %v1269_v34, 0.0  ;;  %vm1231_vm1 = vweird.f32 %v2576_v14  ;;  %v1235_v45 = vand.u32 2147483647, %v2576_v14  ;;  %1365 = vmatpush.msra.mxu0 %v1344_v47  ;;  %v1621_v31 = vld [vmem:[%s2843_s6 + $0x70] sm:$0xff]  ;;  %v1618_v32 = vld [vmem:[%s2843_s6 + $0x58] sm:$0xff]  ;;  %v1615_v38 = vld [vmem:[%s2843_s6 + $0x40] sm:$0xff] }
 0x218   : > { %1293 = vrot.lane.b32.xlu1 %v1274_v19, %s2161_s30  ;;  %v1214_v39 = vmul.f32 %v2079_v7, %v1213_v35  ;;  %v1237_v46 = vand.u32 2147483648, %v2576_v14  ;;  %v1277_v48 = vsel %vm1141_vm15, %v1254_v37, 0.0  ;;  %vm1139_vm2 = vcmp.gt.f32.partialorder %v2477_v28, 0.0  ;;  %1944 = vmatpush.msra.mxu2 %v1343_v51  ;;  %v1320_v19 = vld [vmem:[%s2839_s2 + $0x8] sm:$0xff]  ;;  %v1129_v34 = vld [vmem:[%s2845_s8 + $0x10] sm:$0xff] }
 0x219   : > { %1289 = vrot.lane.b32.xlu0 %v1272_v22, %s2161_s30  ;;  %v2081_v36 = vpop.eup %2080  ;;  %vm1236_vm4 = vcmp.eq.f32.partialorder %v1235_v45, 8.507059e+37  ;;  %1366 = vmatpush.msra.mxu0 %v1343_v51  ;;  %vm1140_vm5 = vcmp.gt.f32.partialorder %v2556_v5, 0.0  ;;  %v1333_v13 = vmul.f32 %v2062_v6, %v1321_v8  ;;  %v1331_v15 = vmul.f32 %v2062_v6, %v1319_v11  ;;  %v1325_v22 = vld [vmem:[%s2839_s2 + $0x30] sm:$0xff]  ;;  %v1616_v35 = vld [vmem:[%s2843_s6 + $0x48] sm:$0xff] }
 0x21a   : > { %v1227_v42 = vmul.f32 %v2081_v36, %v2576_v14  ;;  %v1215_v49 = vadd.f32 %v2079_v7, %v1214_v39  ;;  %vm1232_vm8 = vweird.f32 %v2081_v36  ;;  %v1238_v59 = vor.u32 1.1754944e-38, %v1237_v46  ;;  %1946 = vmatpush.msra.mxu2 %v1342_v62  ;;  %1943 = vmatpush.msra.mxu3 %v1344_v47  ;;  %v1613_v45 = vld [vmem:[%s2843_s6 + $0x30] sm:$0xff]  ;;  %v1130_v46 = vld [vmem:[%s2845_s8 + $0x18] sm:$0xff]  ;;  %v1612_v47 = vld [vmem:[%s2843_s6 + $0x28] sm:$0xff] }
 0x21b   : > { %vm2674_vm3 = vmor %vm1231_vm1, %vm1232_vm8  ;;  %1367 = vmatpush.msra.mxu0 %v1342_v62  ;;  %v1336_v18 = vmul.f32 %v2062_v6, %v1324_v16  ;;  %v1334_v20 = vmul.f32 %v2062_v6, %v1322_v17  ;;  %v1332_v21 = vmul.f32 %v2062_v6, %v1320_v19  ;;  %v1337_v24 = vmul.f32 %v2062_v6, %v1325_v22 }
 0x21c   : > { %v1228_v50 = vsub.f32 1.0, %v1227_v42  ;;  %v1219_v52 = vsel %vm2650_vm7, %v2079_v7, %v1215_v49  ;;  %1948 = vmatpush.msra.mxu2 %v1341_v4  ;;  %1945 = vmatpush.msra.mxu3 %v1343_v51  ;;  %v1335_v7 = vmul.f32 %v2062_v6, %v1323_v23  ;;  %v1338_v26 = vmul.f32 %v2062_v6, %v1326_v25  ;;  %v1614_v42 = vld [vmem:[%s2843_s6 + $0x38] sm:$0xff]  ;;  %v1128_v49 = vld [vmem:[%s2845_s8 + $0x8] sm:$0xff]  ;;  %v1611_v51 = vld [vmem:[%s2843_s6 + $0x20] sm:$0xff] }
 0x21d   : > { %v1224_v57 = vsel %vm2640_vm0, %v1223_v41, %v1219_v52  ;;  %1368 = vmatpush.msra.mxu0 %v1341_v4  ;;  %v2162_v27 = vmov 0   ;;  %1624 = vmatpush.msra.mxu1 %v1621_v31  ;;  %v1133_v6 = vld [vmem:[%s2845_s8 + $0x30] sm:$0xff]  ;;  %v1396_v19 = vmul.f32 0.5, %v2417_v54  ;;  %v1398_v22 = vmul.f32 0.5, %v2415_v53  ;;  %v2063_v54 = vld [vmem:[%s2846_s9] ss:$0 sm:$0xff] }
 0x21e   : > { %v1229_v56 = vmul.f32 %v2081_v36, %v1228_v50  ;;  %v1275_v63 = vsel %vm1139_vm2, %v1224_v57, 0.0  ;;  %1950 = vmatpush.msra.mxu2 %v1340_v10  ;;  %1947 = vmatpush.msra.mxu3 %v1342_v62  ;;  %v1132_v62 = vld [vmem:[%s2845_s8 + $0x28] sm:$0xff]  ;;  %v1399_v25 = vmul.f32 0.5, %v2419_v55  ;;  %v1401_v55 = vmul.f32 0.5, %v2556_v5 }
 0x21f   : > { %1295 = vrot.lane.b32.xlu2 %v1275_v63, %s2161_s30  ;;  %1369 = vmatpush.msra.mxu0 %v1340_v10 }
 0x220   : > { %1301 = vrot.lane.b32.xlu1 %v1278_v43, %s2161_s30  ;;  %v1230_v1 = vadd.f32 %v2081_v36, %v1229_v56  ;;  %1952 = vmatpush.msra.mxu2 %v1339_v12  ;;  %v1131_v43 = vld [vmem:[%s2845_s8 + $0x20] sm:$0xff] }
 0x221   : > { %1299 = vrot.lane.b32.xlu0 %v1277_v48, %s2161_s30  ;;  %1377 = vmatmul.f32.vlgmr.msra.gmra.mxu2 %v1333_v13  ;;  %v1606_v13 = vld [vmem:[%s2840_s3] sm:$0xff] }
 0x222   : > { %v1234_v2 = vsel %vm2674_vm3, %v2081_v36, %v1230_v1  ;;  %1370 = vmatpush.msra.mxu0 %v1339_v12  ;;  %1949 = vmatpush.msra.mxu3 %v1341_v4  ;;  %v1127_v36 = vld [vmem:[%s2845_s8] sm:$0xff]  ;;  %v1134_v1 = vld [vmem:[%s2845_s8 + $0x38] sm:$0xff]  ;;  %v1608_v4 = vld [vmem:[%s2843_s6 + $0x8] sm:$0xff] }
 0x223   : > { %v1239_v9 = vsel %vm1236_vm4, %v1238_v59, %v1234_v2  ;;  %1371 = vmatmul.f32.vlgmr.msra.gmra.mxu0 %v1331_v15  ;;  %2061 = vset.pattern.permute.xlu1 %v2162_v27  ;;  %v1609_v59 = vld [vmem:[%s2843_s6 + $0x10] sm:$0xff] }
 0x224   : > { %v1276_v14 = vsel %vm1140_vm5, %v1239_v9, 0.0  ;;  %1951 = vmatpush.msra.mxu3 %v1340_v10  ;;  %2059 = vset.pattern.permute.xlu2 %v2162_v27 }
 0x225   : > { %2060 = vset.pattern.permute.xlu0 %v2162_v27  ;;  %1625 = vmatpush.msra.mxu1 %v1620_v29  ;;  %v1397_v27 = vmul.f32 0.5, %v2424_v60  ;;  %v1400_v29 = vmul.f32 0.5, %v2477_v28 }
 0x226   : > { %1953 = vmatpush.msra.mxu3 %v1339_v12  ;;  %v1607_v12 = vld [vmem:[%s2843_s6] sm:$0xff] }
 0x227   : > { %1297 = vrot.lane.b32.xlu2 %v1276_v14, %s2161_s30  ;;  %1386 = vmatmul.f32.vlgmr.msra.gmra.mxu3 %v1336_v18 }
 0x228   : > { %1626 = vmatpush.msra.mxu1 %v1619_v3 }
 0x229   : > { %1380 = vmatmul.f32.gmra.mxu2 %v1334_v20 }
 0x22a   : > { %1627 = vmatpush.msra.mxu1 %v1618_v32 }
 0x22b   : > { %1374 = vmatmul.f32.gmra.mxu0 %v1332_v21 }
 0x22c   : > { %1628 = vmatpush.msra.mxu1 %v1617_v33 }
 0x22e   : > { %1629 = vmatpush.msra.mxu1 %v1616_v35 }
 0x22f   : > { %1389 = vmatmul.f32.gmra.mxu3 %v1337_v24 }
 0x230   : > { %1630 = vmatpush.msra.mxu1 %v1615_v38 }
 0x231   : > { %1383 = vmatmul.f32.gmra.mxu2 %v1335_v7 }
 0x232   : > { %1631 = vmatpush.msra.mxu1 %v1614_v42 }
 0x234   : > { %1632 = vmatpush.msra.mxu1 %v1613_v45 }
 0x236   : > { %1633 = vmatpush.msra.mxu1 %v1612_v47 }
 0x237   : > { %1392 = vmatmul.f32.gmra.mxu3 %v1338_v26 }
 0x238   : > { %1634 = vmatpush.msra.mxu1 %v1611_v51 }
 0x23a   : > { %1635 = vmatpush.msra.mxu1 %v1610_v58 }
 0x23c   : > { %1636 = vmatpush.msra.mxu1 %v1609_v59 }
 0x23e   : > { %1637 = vmatpush.msra.mxu1 %v1608_v4 }
 0x240   : > { %1638 = vmatpush.msra.mxu1 %v1607_v12 }
 0x241   : > { %1639 = vmatmul.f32.vlgmr.msra.gmra.mxu1 %v1606_v13 }
 0x279   : > { %v1296_v44 = vpop.permute.xlu2 %1295 }
 0x27a   : > { %v1315_v48 = vmul.f32 %v1296_v44, %v1131_v43  ;;  %v1403_v44 = vmul.f32 0.5, %v2426_v61 }
 0x281   : > { %v1298_v63 = vpop.permute.xlu2 %1297 }
 0x282   : > { %v1292_v37 = vpop.permute.xlu1 %1291  ;;  %v1316_v8 = vmul.f32 %v1298_v63, %v1132_v62 }
 0x283   : > { %v1313_v39 = vmul.f32 %v1292_v37, %v1129_v34  ;;  %v1288_v40 = vpop.permute.xlu0 %1287 }
 0x284   : > { %v1311_v41 = vmul.f32 %v1288_v40, %v1127_v36 }
 0x285   : > { %1416 = vperm.xlu1 %2061, %v1313_v39  }
 0x286   : > { %1406 = vperm.xlu2 %2059, %v1311_v41  }
 0x28a   : > { %v1294_v50 = vpop.permute.xlu1 %1293 }
 0x28b   : > { %v1314_v52 = vmul.f32 %v1294_v50, %v1130_v46  ;;  %v1290_v56 = vpop.permute.xlu0 %1289 }
 0x28c   : > { %v1312_v57 = vmul.f32 %v1290_v56, %v1128_v49  ;;  %v2163_v49 = vmov 64.0  }
 0x28d   : > { %1426 = vperm.xlu1 %2061, %v1315_v48   ;;  %v1402_v48 = vmul.f32 0.5, %v2428_v0  ;;  %2082 = vrcp.f32 %v2163_v49 }
 0x28e   : > { %1411 = vperm.xlu0 %2060, %v1312_v57   ;;  %1421 = vperm.xlu2 %2059, %v1314_v52  }
 0x292   : > { %v1302_v2 = vpop.permute.xlu1 %1301 }
 0x293   : > { %v1318_v9 = vmul.f32 %v1302_v2, %v1134_v1  ;;  %v1300_v10 = vpop.permute.xlu0 %1299  ;;  %v2083_v61 = vpop.eup %2082 }
 0x294   : > { %v1317_v11 = vmul.f32 %v1300_v10, %v1133_v6  ;;  %vm1498_vm6 = vweird.f32 %v2083_v61 }
 0x295   : > { %1441 = vperm.xlu1 %2061, %v1318_v9  }
 0x296   : > { %1436 = vperm.xlu0 %2060, %v1317_v11   ;;  %1431 = vperm.xlu2 %2059, %v1316_v8   ;;  %v1494_v11 = vmul.f32 64.0, %v2083_v61 }
 0x2a0   : > { %v1372_v17 = vpop.f32.mrf.mxu0 }
 0x2a1   : > { %v1452_v24 = vmul.f32 0.5, %v1372_v17 }
 0x2a4   : > { %v1378_v14 = vpop.f32.mrf.mxu2 }
 0x2a5   : > { %v1454_v36 = vmul.f32 0.5, %v1378_v14 }
 0x2a8   : > { %v1375_v26 = vpop.f32.mrf.mxu0 }
 0x2a9   : > { %v1453_v31 = vmul.f32 0.5, %v1375_v26 }
 0x2aa   : > { %v1387_v15 = vpop.f32.mrf.mxu3 }
 0x2ab   : > { %v1457_v43 = vmul.f32 0.5, %v1387_v15 }
 0x2ac   : > { %v1381_v20 = vpop.f32.mrf.mxu2 }
 0x2ad   : > { %v1455_v33 = vmul.f32 0.5, %v1381_v20 }
 0x2b2   : > { %v1390_v23 = vpop.f32.mrf.mxu3 }
 0x2b3   : > { %v1458_v57 = vmul.f32 0.5, %v1390_v23 }
 0x2b4   : > { %v1384_v34 = vpop.f32.mrf.mxu2 }
 0x2b5   : > { %v1456_v39 = vmul.f32 0.5, %v1384_v34 }
 0x2ba   : > { %v1393_v47 = vpop.f32.mrf.mxu3 }
 0x2bb   : > { %v1459_v58 = vmul.f32 0.5, %v1393_v47 }
 0x2e0   : > { %v1407_v16 = vpop.permute.xlu2 %1406 }
 0x2e1   : > { %v1444_v7 = vmul.f32 %v1407_v16, %v1396_v19  ;;  %v1495_v16 = vsub.f32 1.0, %v1494_v11 }
 0x2e3   : > { %v1460_v32 = vadd.f32 %v1452_v24, %v1444_v7  ;;  %v1496_v19 = vmul.f32 %v2083_v61, %v1495_v16 }
 0x2e5   : > { %v1472_v28 = vadd.f32 %v2063_v54, %v1460_v32 }
 0x2e8   : > { %v1422_v21 = vpop.permute.xlu2 %1421 }
 0x2e9   : > { %v1447_v53 = vmul.f32 %v1422_v21, %v1399_v25 }
 0x2eb   : > { %v1463_v42 = vadd.f32 %v1455_v33, %v1447_v53 }
 0x2ed   : > { %v1475_v56 = vadd.f32 %v2063_v54, %v1463_v42 }
 0x2f0   : > { %v1432_v38 = vpop.permute.xlu2 %1431 }
 0x2f1   : > { %v1449_v45 = vmul.f32 %v1432_v38, %v1401_v55 }
 0x2f3   : > { %v1465_v62 = vadd.f32 %v1457_v43, %v1449_v45 }
 0x2f5   : > { %v1477_v9 = vadd.f32 %v2063_v54, %v1465_v62 }
 0x2f7   : > { %v1417_v18 = vpop.permute.xlu1 %1416 }
 0x2f8   : > { %v1446_v30 = vmul.f32 %v1417_v18, %v1398_v22  ;;  %v1497_v22 = vadd.f32 %v2083_v61, %v1496_v19 }
 0x2fa   : > { %v1462_v60 = vadd.f32 %v1454_v36, %v1446_v30  ;;  %v1499_v7 = vsel %vm1498_vm6, %v2083_v61, %v1497_v22  ;;  %v2065_v61 = vld [vmem:[%s2848_s11] ss:$0 sm:$0xff] }
 0x2fc   : > { %v1474_v50 = vadd.f32 %v2063_v54, %v1462_v60 }
 0x2ff   : > { %v1427_v3 = vpop.permute.xlu1 %1426 }
 0x300   : > { %v1412_v35 = vpop.permute.xlu0 %1411  ;;  %v1448_v40 = vmul.f32 %v1427_v3, %v1400_v29 }
 0x301   : > { %v1445_v37 = vmul.f32 %v1412_v35, %v1397_v27 }
 0x302   : > { %v1464_v5 = vadd.f32 %v1456_v39, %v1448_v40 }
 0x303   : > { %v1461_v41 = vadd.f32 %v1453_v31, %v1445_v37 }
 0x304   : > { %v1476_v6 = vadd.f32 %v2063_v54, %v1464_v5 }
 0x305   : > { %v1473_v46 = vadd.f32 %v2063_v54, %v1461_v41 }
 0x307   : > { %v1480_v51 = vadd.f32 %v1473_v46, %v1472_v28  ;;  %v1442_v52 = vpop.permute.xlu1 %1441 }
 0x308   : > { %v1437_v59 = vpop.permute.xlu0 %1436  ;;  %v1451_v1 = vmul.f32 %v1442_v52, %v1403_v44  ;;  %v1640_v52 = vpop.f32.mrf.mxu1 }
 0x309   : > { %v1481_v63 = vadd.f32 %v1480_v51, %v1474_v50  ;;  %v1450_v4 = vmul.f32 %v1437_v59, %v1402_v48  ;;  %1643 = vst [vmem:[#allocation4] sm:$0xff] %v1640_v52 }
 0x30a   : > { %v1467_v0 = vadd.f32 %v1459_v58, %v1451_v1  ;;  %v2064_v1 = vld [vmem:[%s2847_s10] ss:$0 sm:$0xff] }
 0x30b   : > { %v1482_v2 = vadd.f32 %v1481_v63, %v1475_v56  ;;  %v1466_v8 = vadd.f32 %v1458_v57, %v1450_v4 }
 0x30c   : > { %v1479_v14 = vadd.f32 %v2063_v54, %v1467_v0 }
 0x30d   : > { %v1483_v10 = vadd.f32 %v1482_v2, %v1476_v6  ;;  %v1478_v13 = vadd.f32 %v2063_v54, %v1466_v8 }
 0x30f   : > { %v1484_v12 = vadd.f32 %v1483_v10, %v1477_v9 }
 0x311   : > { %v1485_v15 = vadd.f32 %v1484_v12, %v1478_v13 }
 0x313   : > { %v1486_v17 = vadd.f32 %v1485_v15, %v1479_v14 }
 0x315   : > { %v1487_v18 = vrot.slane %v1486_v17, 4 }
 0x317   : > { %v1488_v20 = vadd.f32 %v1487_v18, %v1486_v17 }
 0x319   : > { %v1489_v21 = vrot.slane %v1488_v20, 2 }
 0x31b   : > { %v1490_v23 = vadd.f32 %v1489_v21, %v1488_v20 }
 0x31d   : > { %v1491_v24 = vrot.slane %v1490_v23, 1 }
 0x31f   : > { %v1492_v25 = vadd.f32 %v1491_v24, %v1490_v23 }
 0x321   : > { %v1500_v26 = vmul.f32 %v1499_v7, %v1492_v25 }
 0x323   : > { %v1501_v27 = vsub.f32 %v1472_v28, %v1500_v26  ;;  %v1502_v30 = vsub.f32 %v1473_v46, %v1500_v26  ;;  %v1503_v31 = vsub.f32 %v1474_v50, %v1500_v26  ;;  %v1504_v29 = vsub.f32 %v1475_v56, %v1500_v26 }
 0x324   : > { %v1505_v32 = vsub.f32 %v1476_v6, %v1500_v26  ;;  %v1506_v34 = vsub.f32 %v1477_v9, %v1500_v26  ;;  %v1507_v55 = vsub.f32 %v1478_v13, %v1500_v26  ;;  %v1508_v60 = vsub.f32 %v1479_v14, %v1500_v26 }
 0x325   : > { %v1509_v3 = vmul.f32 %v1501_v27, %v1501_v27  ;;  %v1510_v54 = vmul.f32 %v1502_v30, %v1502_v30  ;;  %v1511_v33 = vmul.f32 %v1503_v31, %v1503_v31  ;;  %v1512_v35 = vmul.f32 %v1504_v29, %v1504_v29 }
 0x326   : > { %v1513_v37 = vmul.f32 %v1505_v32, %v1505_v32  ;;  %v1514_v39 = vmul.f32 %v1506_v34, %v1506_v34  ;;  %v1515_v41 = vmul.f32 %v1507_v55, %v1507_v55  ;;  %v1516_v28 = vmul.f32 %v1508_v60, %v1508_v60 }
 0x327   : > { %v1517_v53 = vadd.f32 %v1510_v54, %v1509_v3 }
 0x329   : > { %v1518_v36 = vadd.f32 %v1517_v53, %v1511_v33 }
 0x32b   : > { %v1519_v38 = vadd.f32 %v1518_v36, %v1512_v35 }
 0x32d   : > { %v1520_v40 = vadd.f32 %v1519_v38, %v1513_v37 }
 0x32f   : > { %v1521_v42 = vadd.f32 %v1520_v40, %v1514_v39 }
 0x331   : > { %v1522_v43 = vadd.f32 %v1521_v42, %v1515_v41 }
 0x333   : > { %v1523_v44 = vadd.f32 %v1522_v43, %v1516_v28 }
 0x335   : > { %v1524_v45 = vrot.slane %v1523_v44, 4 }
 0x337   : > { %v1525_v46 = vadd.f32 %v1524_v45, %v1523_v44 }
 0x339   : > { %v1526_v47 = vrot.slane %v1525_v46, 2 }
 0x33b   : > { %v1527_v48 = vadd.f32 %v1526_v47, %v1525_v46 }
 0x33d   : > { %v1528_v49 = vrot.slane %v1527_v48, 1 }
 0x33f   : > { %v1529_v50 = vadd.f32 %v1528_v49, %v1527_v48 }
 0x341   : > { %v1530_v5 = vmul.f32 %v1529_v50, %v1499_v7 }
 0x343   : > { %v1531_v51 = vadd.f32 1e-05, %v1530_v5 }
 0x345   : > { %2084 = vrsqrt.f32 %v1531_v51  ;;  %vm1538_vm10 = vweird.f32 %v1531_v51 }
 0x34b   : > { %v2085_v56 = vpop.eup %2084 }
 0x34c   : > { %v1533_v57 = vmul.f32 %v2085_v56, %v1531_v51  ;;  %vm1539_vm9 = vweird.f32 %v2085_v56 }
 0x34d   : > { %vm1540_vm11 = vmor %vm1538_vm10, %vm1539_vm9 }
 0x34e   : > { %v1534_v58 = vmul.f32 %v2085_v56, %v1533_v57 }
 0x350   : > { %v1535_v59 = vmul.f32 0.5, %v1534_v58 }
 0x352   : > { %v1536_v62 = vsub.f32 1.5, %v1535_v59 }
 0x354   : > { %v1537_v63 = vmul.f32 %v2085_v56, %v1536_v62 }
 0x356   : > { %v1541_v4 = vsel %vm1540_vm11, %v2085_v56, %v1537_v63 }
 0x357   : > { %v1542_v6 = vmul.f32 %v1541_v4, %v1501_v27  ;;  %v1543_v2 = vmul.f32 %v1541_v4, %v1502_v30  ;;  %v1544_v8 = vmul.f32 %v1541_v4, %v1503_v31  ;;  %v1545_v9 = vmul.f32 %v1541_v4, %v1504_v29 }
 0x358   : > { %v1546_v0 = vmul.f32 %v1541_v4, %v1505_v32  ;;  %v1547_v10 = vmul.f32 %v1541_v4, %v1506_v34  ;;  %v1548_v11 = vmul.f32 %v1541_v4, %v1507_v55  ;;  %v1549_v12 = vmul.f32 %v1541_v4, %v1508_v60 }
 0x359   : > { %v1554_v13 = vmul.f32 %v2064_v1, %v1542_v6  ;;  %v1555_v14 = vmul.f32 %v2064_v1, %v1543_v2  ;;  %v1556_v15 = vmul.f32 %v2064_v1, %v1544_v8  ;;  %v1557_v16 = vmul.f32 %v2064_v1, %v1545_v9 }
 0x35a   : > { %v1558_v17 = vmul.f32 %v2064_v1, %v1546_v0  ;;  %v1559_v18 = vmul.f32 %v2064_v1, %v1547_v10  ;;  %v1560_v19 = vmul.f32 %v2064_v1, %v1548_v11  ;;  %v1561_v20 = vmul.f32 %v2064_v1, %v1549_v12 }
 0x35b   : > { %v1566_v21 = vadd.f32 %v2065_v61, %v1554_v13  ;;  %v1567_v22 = vadd.f32 %v2065_v61, %v1555_v14  ;;  %v1568_v23 = vadd.f32 %v2065_v61, %v1556_v15  ;;  %v1569_v24 = vadd.f32 %v2065_v61, %v1557_v16 }
 0x35c   : > { %v1570_v7 = vadd.f32 %v2065_v61, %v1558_v17  ;;  %v1571_v25 = vadd.f32 %v2065_v61, %v1559_v18  ;;  %v1572_v26 = vadd.f32 %v2065_v61, %v1560_v19  ;;  %v1573_v27 = vadd.f32 %v2065_v61, %v1561_v20 }
 0x35d   : > { %vm1574_vm12 = vcmp.ge.f32.partialorder %v1566_v21, 0.0  ;;  %vm1575_vm13 = vcmp.ge.f32.partialorder %v1567_v22, 0.0  ;;  %vm1576_vm14 = vcmp.ge.f32.partialorder %v1568_v23, 0.0  ;;  %vm1577_vm15 = vcmp.ge.f32.partialorder %v1569_v24, 0.0 }
 0x35e   : > { %vm1578_vm0 = vcmp.ge.f32.partialorder %v1570_v7, 0.0  ;;  %v1582_v30 = vmul.f32 0.01, %v1566_v21  ;;  %v1583_v31 = vmul.f32 0.01, %v1567_v22  ;;  %vm1579_vm7 = vcmp.ge.f32.partialorder %v1571_v25, 0.0 }
 0x35f   : > { %v1584_v29 = vmul.f32 0.01, %v1568_v23  ;;  %v1585_v3 = vmul.f32 0.01, %v1569_v24  ;;  %v1586_v54 = vmul.f32 0.01, %v1570_v7 }
 0x360   : > { %v1587_v32 = vmul.f32 0.01, %v1571_v25  ;;  %v1588_v33 = vmul.f32 0.01, %v1572_v26  ;;  %v1590_v53 = vsel %vm1574_vm12, %v1566_v21, %v1582_v30  ;;  %v1591_v34 = vsel %vm1575_vm13, %v1567_v22, %v1583_v31 }
 0x361   : > { %vm1580_vm1 = vcmp.ge.f32.partialorder %v1572_v26, 0.0  ;;  %v1589_v35 = vmul.f32 0.01, %v1573_v27  ;;  %v1592_v36 = vsel %vm1576_vm14, %v1568_v23, %v1584_v29  ;;  %v1593_v55 = vsel %vm1577_vm15, %v1569_v24, %v1585_v3  ;;  %1598 = vst [vmem:[#allocation2] sm:$0xff] %v1590_v53 }
 0x362   : > { %vm1581_vm8 = vcmp.ge.f32.partialorder %v1573_v27, 0.0  ;;  %v1594_v37 = vsel %vm1578_vm0, %v1570_v7, %v1586_v54  ;;  %1599 = vst [vmem:[#allocation2 + $0x8] sm:$0xff] %v1591_v34  ;;  %v1595_v38 = vsel %vm1579_vm7, %v1571_v25, %v1587_v32  ;;  %v1596_v60 = vsel %vm1580_vm1, %v1572_v26, %v1588_v33 }
 0x363   : > { %1600 = vst [vmem:[#allocation2 + $0x10] sm:$0xff] %v1592_v36  ;;  %v1597_v39 = vsel %vm1581_vm8, %v1573_v27, %v1589_v35 }
 0x364   : > { %1601 = vst [vmem:[#allocation2 + $0x18] sm:$0xff] %v1593_v55 }
 0x365   : > { %1602 = vst [vmem:[#allocation2 + $0x20] sm:$0xff] %v1594_v37 }
 0x366   : > { %1603 = vst [vmem:[#allocation2 + $0x28] sm:$0xff] %v1595_v38 }
 0x367   : > { %1604 = vst [vmem:[#allocation2 + $0x30] sm:$0xff] %v1596_v60 }
 0x368   : > { %1605 = vst [vmem:[#allocation2 + $0x38] sm:$0xff] %v1597_v39 }
 0x369 PF: > { %p2034_p6 = scmp.eq.s32.totalorder %s2246_s26, 3  ;;  %s2164_s23 = smov [#allocation2]  }
 0x36a   : > { %s1649_s24 = sshll.u32 %s2164_s23, 4  ;;  %s1651_s29 = sshll.u32 %s2849_s12, 4  ;;  %s1650_s24 = int_to_ptr.vmem [resolvable:$true] %s1649_s24  ;;  %s1652_s29 = int_to_ptr.hbm [resolvable:$true] %s1651_s29 }
 0x36b   : > { %s2165_s14 = smov 128   ;;  %s2166_s16 = smov 8  }
 0x36c   : > { %2027 = dma.vmem_to_hbm [thread:$0]  (%p2034_p6), %s1650_s24, 1024, %s1652_s29, [#allocation3], %s2165_s14, %s2165_s14, %s2166_s16  }
 0x36d   : > { %s1666_s20 = sshll.u32 %s2850_s13, 4  ;;  %s2167_s21 = smov [#allocation4]   ;;  %s1667_s20 = int_to_ptr.hbm [resolvable:$true] %s1666_s20 }
 0x36e   : > { %s1664_s15 = sshll.u32 %s2167_s21, 4  ;;  %s1665_s15 = int_to_ptr.vmem [resolvable:$true] %s1664_s15 }
 0x36f   : > { %2029 = dma.vmem_to_hbm [thread:$0]  (%p2034_p6), %s1665_s15, 128, %s1667_s20, [#allocation5]  }
 0x370   : > { %2147 = dma.done.wait (%p2034_p6), [#allocation3], 1024  }
 0x371   : > { %2149 = vsyncadd (%p2034_p6), [#allocation3], 4294966272 }
 0x372   : > { %2151 = dma.done.wait (%p2034_p6), [#allocation5], 128  }
 0x373   : > { %2153 = vsyncadd (%p2034_p6), [#allocation5], 4294967168 }
 0x374 PF: > { %s26_s25 = sadd.s32 1, %s2156_s25  }
 0x375   : > { %p23_p7 = scmp.ge.s32.totalorder %s26_s25, 6  }
 0x377   :  { %25 = sbr.rel (!%p23_p7) target bundleno = 2 (0x2), region = 114 }
 0x37c   :  { %1685 = vsyncpa [#allocation3], 1 }
 0x37d   :  { %1687 = vsyncpa [#allocation3 + $0x1], 1 }
 0x37e   :  { %1688 = vsyncpa [#allocation5], 1 }

</bundles_post_ra>
